<compile_context>
chip_gen: v5e
topology: v5e:2x2
jax: 0.10.0
libtpu: 0.0.40
codegen_flags: <defaults>
</compile_context>

<pallas_src>
import jax
import jax.numpy as jnp
from jax import lax
from jax.experimental import pallas as pl
from jax.experimental.pallas import tpu as pltpu


def _vmem_limit_bytes():
    """Generation-aware scoped-VMEM budget (half of physical, clamped 32-64 MiB)."""
    try:
        cap = int(pltpu.get_tpu_info().vmem_capacity_bytes)
    except Exception:
        kind = jax.devices()[0].device_kind.lower()
        cap = (64 if ("v7" in kind or "7x" in kind) else 128) * 1024 * 1024
    return int(min(64 * 1024 * 1024, max(32 * 1024 * 1024, cap // 2)))


# ----------------------------------------------------------------------------
# Kernel 1: single-layer LSTM recurrence, pipelined over (batch-tile, time-chunk).
# The input projection is precomputed (hoisted) so each serial step only does
# the h @ Whh matmul (bf16 operands, f32 accumulation).  Output is written
# batch-major so no XLA transpose is needed afterwards.
# ----------------------------------------------------------------------------
def lstm_kernel(gx_ref, whh_ref, out_ref, h_scr, c_scr):
    # gx_ref:   (Tc, bb, 4H) bf16  precomputed x_t @ Wih^T + (b_ih + b_hh), time-major
    # whh_ref:  (H, 4H)      bf16  recurrent weight, transposed (gate order i, f, g, o)
    # out_ref:  (bb, Tc, H)  bf16  hidden states for this (batch-tile, time-chunk)
    # h_scr/c_scr: (bb, H)   f32   carried LSTM state (persists across time chunks)
    @pl.when(pl.program_id(1) == 0)
    def _():
        h_scr[...] = jnp.zeros_like(h_scr)
        c_scr[...] = jnp.zeros_like(c_scr)

    f32 = jnp.float32
    bf16 = jnp.bfloat16
    Tc = gx_ref.shape[0]
    H = whh_ref.shape[0]
    whh = whh_ref[...]                       # loop-invariant bf16 weight
    # TODO(synk): on v6e/v7x, hold Whh in MXU weight registers across the chunk
    # with pltpu.matmul_push_rhs/acc_lhs/pop instead of re-feeding it per step.

    h = h_scr[...]
    c = c_scr[...]
    # Static unroll: store indices are static (plain sublane stores), and only
    # the small (bb, H) h/c carry stays live across steps.  Lower Tc if the
    # bundle dump shows vreg spills.
    for s in range(Tc):
        gates = gx_ref[s].astype(f32) + jnp.dot(
            h.astype(bf16), whh, preferred_element_type=f32)
        # NOTE: gate slices are lane-aligned whenever H % 128 == 0.
        i_g = jax.nn.sigmoid(gates[:, 0:H])
        f_g = jax.nn.sigmoid(gates[:, H:2 * H])
        g_g = jnp.tanh(gates[:, 2 * H:3 * H])
        o_g = jax.nn.sigmoid(gates[:, 3 * H:4 * H])
        c = f_g * c + i_g * g_g
        h = o_g * jnp.tanh(c)
        out_ref[:, s, :] = h.astype(out_ref.dtype)
    h_scr[...] = h
    c_scr[...] = c


# ----------------------------------------------------------------------------
# Kernel 2 (grid over (batch, query tile)): additive attention scores, mask,
# attention matmul, output projection, and gather of the final trajectory row.
# Key features w1k are cached across the query-tile axis; queries are sliced
# from the resident key block (no duplicated input DMA).
# ----------------------------------------------------------------------------
def _make_attention_kernel(compute_dtype):
    def attention_kernel(len_ref, hk_ref, w1t_ref, b1r_ref, b1c_ref,
                         w2c_ref, b2_ref, wp_ref, bp_ref,
                         prob_ref, final_ref, w1k_scr):
        # len_ref:  (B,) int32 lengths in SMEM (scalar prefetch)
        # hk_ref:   (1, T, H) bf16   LSTM outputs (keys; queries sliced from it)
        # w1t_ref:  (A, H) bf16, b1r_ref: (1, A), b1c_ref: (A, 1)   attn_fc1
        # w2c_ref:  (A, 1), b2_ref: (1, 1)                          attn_fc2
        # wp_ref:   (H, V) bf16, bp_ref: (1, V)                     prb_fc
        # prob_ref: (1, tq, V) f32, final_ref: (1, 1, H) f32
        # w1k_scr:  (A, T) compute_dtype -- persists across the q axis
        f32 = jnp.float32
        bf16 = jnp.bfloat16
        b = pl.program_id(0)
        qi = pl.program_id(1)
        T = hk_ref.shape[1]
        tq = prob_ref.shape[1]
        A = w1t_ref.shape[0]
        q_start = pl.multiple_of(qi * tq, tq)
        length = len_ref[b]

        hk_view = hk_ref.at[0]                              # (T, H) ref view
        hk = hk_view[...]                                   # (T, H) bf16
        w1t = w1t_ref[...]                                  # (A, H) bf16

        # Key-side attn_fc1 features in lane-dense (A, T) layout, computed once
        # per batch element and cached in VMEM scratch across query tiles.
        # Also zero-init the resident `final` output block for robustness.
        @pl.when(qi == 0)
        def _():
            w1k = lax.dot_general(w1t, hk, (((1,), (1,)), ((), ())),
                                  preferred_element_type=f32) + b1c_ref[...]
            w1k_scr[...] = w1k.astype(compute_dtype)
            final_ref[...] = jnp.zeros_like(final_ref)

        hq = hk_view[pl.ds(q_start, tq), :]                 # (tq, H) bf16

        w1q = (lax.dot_general(hq, w1t, (((1,), (1,)), ((), ())),
                               preferred_element_type=f32)
               + b1r_ref[...]).astype(compute_dtype)        # (tq, A)
        w1k_c = w1k_scr[...]                                # (A, T)
        w2v = w2c_ref[...]                                  # (A, 1) f32

        # TODO(synk): for very large T on v7x, add a key-tile grid axis (and a
        # refined accumulator scratch) so the (tq, T) temps and (T, H) keys stay
        # within the 64 MiB VMEM; that also enables skipping fully-padded key tiles.
        acc = jnp.zeros((tq, T), f32)
        for k in range(A):        # static unroll; tanh (EUP) is the hot phase
            th_k = jnp.tanh(w1q[:, k:k + 1] + w1k_c[k:k + 1, :])        # (tq, T)
            acc = acc + w2v[k:k + 1, :] * th_k.astype(f32)
        scores = acc + b2_ref[...]                                      # (tq, T)

        # validity mask built from the prefetched lengths
        # (scores * mask, no softmax -- matches the reference model).
        k_ids = lax.broadcasted_iota(jnp.int32, (1, T), 1)
        q_ids = lax.broadcasted_iota(jnp.int32, (tq, 1), 0) + q_start
        valid = jnp.logical_and(q_ids < length, k_ids < length)
        attn = (scores * valid.astype(f32)).astype(bf16)                # (tq, T)

        refined = jnp.dot(attn, hk, preferred_element_type=f32)         # (tq, H)
        prob_ref[0] = (jnp.dot(refined.astype(bf16), wp_ref[...],
                               preferred_element_type=f32) + bp_ref[...])

        # final trajectory embedding: row (length - 1), gathered with a one-hot
        # matmul when that row falls inside this query tile (lengths >= 1).
        idx = length - 1
        @pl.when(jnp.logical_and(idx >= q_start, idx < q_start + tq))
        def _():
            sel = (lax.broadcasted_iota(jnp.int32, (1, tq), 1)
                   == (idx - q_start)).astype(f32)
            final_ref[0] = jnp.dot(sel, refined, preferred_element_type=f32)

    return attention_kernel


# ----------------------------------------------------------------------------
# Tile pickers
# ----------------------------------------------------------------------------
def _pick_time_chunk(T):
    for c in (32, 16, 8):
        if T % c == 0:
            return c
    return T


def _pick_query_tile(T):
    for c in (256, 128):
        if T % c == 0:
            return c
    return T


# ----------------------------------------------------------------------------
# Wrapper
# ----------------------------------------------------------------------------
def attention_model_forward(params, input_seq, input_seq_length):
    B, T = input_seq.shape
    H = params["whh"].shape[1]
    V = params["wp"].shape[0]
    A = params["w1"].shape[0]
    f32, bf16 = jnp.float32, jnp.bfloat16

    vmem_limit = _vmem_limit_bytes()
    lens = input_seq_length.astype(jnp.int32)

    # ---- glue (XLA): embedding gather + hoisted LSTM input projection,
    #      produced directly time-major (no transpose pass), stored in bf16.
    emb = params["emb"][input_seq].astype(f32)                          # (B, T, E)
    bias = (params["bih"] + params["bhh"])[None, None, :]
    gx_t = (jnp.einsum("bte,ge->tbg", emb, params["wih"]) + bias).astype(bf16)  # (T,B,4H)
    whh_t = params["whh"].T.astype(bf16)                                # (H, 4H)

    # ---- kernel 1: recurrent LSTM, pipelined over (batch-tile, time-chunk) ----
    Tc = _pick_time_chunk(T)
    # Megacore (v7x) batch split; only when each half keeps tiled sublanes.
    nb = 2 if (B % 32 == 0) else 1
    bb = B // nb
    lstm_out = pl.pallas_call(
        lstm_kernel,
        out_shape=jax.ShapeDtypeStruct((B, T, H), bf16),                # batch-major
        grid=(nb, T // Tc),
        in_specs=[
            pl.BlockSpec((Tc, bb, 4 * H), lambda bi, ti: (ti, bi, 0)),
            pl.BlockSpec((H, 4 * H), lambda bi, ti: (0, 0)),
        ],
        out_specs=pl.BlockSpec((bb, Tc, H), lambda bi, ti: (bi, ti, 0)),
        scratch_shapes=[pltpu.VMEM((bb, H), f32),
                        pltpu.VMEM((bb, H), f32)],
        compiler_params=pltpu.CompilerParams(
            dimension_semantics=("parallel", "arbitrary"),
            vmem_limit_bytes=vmem_limit),
    )(gx_t, whh_t)

    # ---- kernel 2: additive attention + output projection ------------------
    # bf16 score phase where the VPU/EUP support it (v6e / v7x); f32 on v5e.
    kind = jax.devices()[0].device_kind.lower()
    score_dtype = (bf16 if any(t in kind for t in ("v6", "v7", "7x")) else f32)

    tq = _pick_query_tile(T)
    nq = T // tq

    w1t = params["w1"].astype(bf16)                                     # (A, H)
    b1_row = params["b1"][None, :].astype(f32)                          # (1, A)
    b1_col = params["b1"][:, None].astype(f32)                          # (A, 1)
    w2_col = params["w2"].T.astype(f32)                                 # (A, 1)
    b2 = params["b2"].reshape(1, 1).astype(f32)                         # (1, 1)
    wp = params["wp"].T.astype(bf16)                                    # (H, V)
    bp = params["bp"][None, :].astype(f32)                              # (1, V)

    grid_spec = pltpu.PrefetchScalarGridSpec(
        num_scalar_prefetch=1,
        grid=(B, nq),
        in_specs=[
            pl.BlockSpec((1, T, H), lambda b, q, l: (b, 0, 0)),         # keys (+queries)
            pl.BlockSpec((A, H), lambda b, q, l: (0, 0)),
            pl.BlockSpec((1, A), lambda b, q, l: (0, 0)),
            pl.BlockSpec((A, 1), lambda b, q, l: (0, 0)),
            pl.BlockSpec((A, 1), lambda b, q, l: (0, 0)),
            pl.BlockSpec((1, 1), lambda b, q, l: (0, 0)),
            pl.BlockSpec((H, V), lambda b, q, l: (0, 0)),
            pl.BlockSpec((1, V), lambda b, q, l: (0, 0)),
        ],
        out_specs=[
            pl.BlockSpec((1, tq, V), lambda b, q, l: (b, q, 0)),
            pl.BlockSpec((1, 1, H), lambda b, q, l: (b, 0, 0)),
        ],
        scratch_shapes=[pltpu.VMEM((A, T), score_dtype)],               # cached w1k
    )
    prob, final = pl.pallas_call(
        _make_attention_kernel(score_dtype),
        grid_spec=grid_spec,
        out_shape=(
            jax.ShapeDtypeStruct((B, T, V), f32),
            jax.ShapeDtypeStruct((B, 1, H), f32),
        ),
        compiler_params=pltpu.CompilerParams(
            dimension_semantics=("parallel", "arbitrary"),
            vmem_limit_bytes=vmem_limit),
    )(lens, lstm_out, w1t, b1_row, b1_col, w2_col, b2, wp, bp)

    return prob, final[:, 0, :]


# ----------------------------------------------------------------------------
# Deterministic parameter init (shapes follow the nn.Module's __init__)
# ----------------------------------------------------------------------------
def init_params(key, vocab_size, emb_size, lstm_size):
    ks = jax.random.split(key, 11)
    s = 0.1
    return {
        "emb": jax.random.normal(ks[0], (vocab_size, emb_size), jnp.float32) * s,
        "wih": jax.random.normal(ks[1], (4 * lstm_size, emb_size), jnp.float32) * s,
        "whh": jax.random.normal(ks[2], (4 * lstm_size, lstm_size), jnp.float32) * s,
        "bih": jax.random.normal(ks[3], (4 * lstm_size,), jnp.float32) * s,
        "bhh": jax.random.normal(ks[4], (4 * lstm_size,), jnp.float32) * s,
        "w1": jax.random.normal(ks[5], (16, lstm_size), jnp.float32) * s,
        "b1": jax.random.normal(ks[6], (16,), jnp.float32) * s,
        "w2": jax.random.normal(ks[7], (1, 16), jnp.float32) * s,
        "b2": jax.random.normal(ks[8], (1,), jnp.float32) * s,
        "wp": jax.random.normal(ks[9], (vocab_size, lstm_size), jnp.float32) * s,
        "bp": jax.random.normal(ks[10], (vocab_size,), jnp.float32) * s,
    }


# ----------------------------------------------------------------------------
# Pure-JAX reference of the PyTorch forward (for a correctness check)
# ----------------------------------------------------------------------------
def reference_forward(params, input_seq, lengths):
    B, T = input_seq.shape
    H = params["whh"].shape[1]
    emb = params["emb"][input_seq]

    def step(carry, xt):
        h, c = carry
        gates = xt @ params["wih"].T + h @ params["whh"].T + params["bih"] + params["bhh"]
        i, f, g, o = jnp.split(gates, 4, axis=-1)
        i = jax.nn.sigmoid(i); f = jax.nn.sigmoid(f)
        g = jnp.tanh(g); o = jax.nn.sigmoid(o)
        c = f * c + i * g
        h = o * jnp.tanh(c)
        return (h, c), h

    h0 = jnp.zeros((B, H), jnp.float32)
    c0 = jnp.zeros((B, H), jnp.float32)
    _, hs = lax.scan(step, (h0, c0), jnp.swapaxes(emb, 0, 1))
    out = jnp.swapaxes(hs, 0, 1)                                  # (B, T, H)
    mask = (jnp.arange(T)[None, :] < lengths[:, None]).astype(jnp.float32)
    out = out * mask[:, :, None]                                  # pad_packed_sequence zeros

    w1 = out @ params["w1"].T + params["b1"]                      # (B, T, 16)
    s = jnp.tanh(w1[:, :, None, :] + w1[:, None, :, :])           # (B, T, T, 16)
    attn = (s @ params["w2"].T)[..., 0] + params["b2"][0]         # (B, T, T)
    attn_mask = mask[:, :, None] * mask[:, None, :]
    attn = attn * attn_mask
    refined = jnp.einsum("btk,bkh->bth", attn, out)
    prob = refined @ params["wp"].T + params["bp"]
    final = refined[jnp.arange(B), lengths - 1, :]
    return prob, final


if __name__ == "__main__":
    vocab_size, emb_size, lstm_size = 16, 32, 32
    B, T = 2, 8

    key = jax.random.PRNGKey(0)
    kp, kd = jax.random.split(key)
    params = init_params(kp, vocab_size, emb_size, lstm_size)
    input_seq = jax.random.randint(kd, (B, T), 0, vocab_size, dtype=jnp.int32)
    # pack_padded_sequence(enforce_sorted=True) expects descending lengths >= 1
    input_seq_length = jnp.array([8, 5], dtype=jnp.int32)

    prob, final = attention_model_forward(params, input_seq, input_seq_length)
    jax.block_until_ready((prob, final))

    prob_ref, final_ref = reference_forward(params, input_seq, input_seq_length)
    assert prob.shape == (B, T, vocab_size)
    assert final.shape == (B, lstm_size)
    assert jnp.allclose(prob, prob_ref, atol=5e-2, rtol=5e-2)
    assert jnp.allclose(final, final_ref, atol=5e-2, rtol=5e-2)

    print("KERNEL_OK")
</pallas_src>

<mosaic_0001>
module attributes {stable_mosaic.version = 11 : i64} {
  func.func @lstm_kernel(%arg0: i32, %arg1: i32, %arg2: memref<8x2x128xbf16, #tpu.memory_space<vmem>>, %arg3: memref<32x128xbf16, #tpu.memory_space<vmem>>, %arg4: memref<2x8x32xbf16, #tpu.memory_space<vmem>>, %arg5: memref<2x32xf32, #tpu.memory_space<vmem>>, %arg6: memref<2x32xf32, #tpu.memory_space<vmem>>) attributes {dimension_semantics = [#tpu.dimension_semantics<parallel>, #tpu.dimension_semantics<arbitrary>], iteration_bounds = array<i64: 1, 1>, scalar_prefetch = 0 : i64, scratch_operands = 2 : i64, tpu.core_type = #tpu.core_type<tc>, window_params = [{transform_indices = @transform_0, window_bounds = array<i64: 8, 2, 128>}, {pipeline_mode = #tpu.pipeline_mode<synchronous>, transform_indices = @transform_1, window_bounds = array<i64: 32, 128>}, {transform_indices = @transform_2, window_bounds = array<i64: 2, 8, 32>}]} {
    %c0_i32 = arith.constant 0 : i32
    %0 = arith.cmpi eq, %arg1, %c0_i32 : i32
    %1 = arith.extui %0 : i1 to i32
    %c0_i32_0 = arith.constant 0 : i32
    %2 = arith.cmpi ne, %1, %c0_i32_0 : i32
    scf.if %2 {
      %cst_82 = arith.constant 0.000000e+00 : f32
      %288 = vector.broadcast %cst_82 : f32 to vector<2x32xf32>
      %c0_83 = arith.constant 0 : index
      %c0_84 = arith.constant 0 : index
      %289 = vector.load %arg5[%c0_83, %c0_84] : memref<2x32xf32, #tpu.memory_space<vmem>>, vector<2x32xf32>
      tpu.vector_store %arg5[%c0_83, %c0_84], %288 {strides = array<i32>} : memref<2x32xf32, #tpu.memory_space<vmem>>, vector<2x32xf32>,
      %cst_85 = arith.constant 0.000000e+00 : f32
      %290 = vector.broadcast %cst_85 : f32 to vector<2x32xf32>
      %c0_86 = arith.constant 0 : index
      %c0_87 = arith.constant 0 : index
      %291 = vector.load %arg6[%c0_86, %c0_87] : memref<2x32xf32, #tpu.memory_space<vmem>>, vector<2x32xf32>
      tpu.vector_store %arg6[%c0_86, %c0_87], %290 {strides = array<i32>} : memref<2x32xf32, #tpu.memory_space<vmem>>, vector<2x32xf32>,
    } else {
    }
    %c0 = arith.constant 0 : index
    %c0_1 = arith.constant 0 : index
    %3 = vector.load %arg3[%c0, %c0_1] : memref<32x128xbf16, #tpu.memory_space<vmem>>, vector<32x128xbf16>
    %c0_2 = arith.constant 0 : index
    %c0_3 = arith.constant 0 : index
    %4 = vector.load %arg5[%c0_2, %c0_3] : memref<2x32xf32, #tpu.memory_space<vmem>>, vector<2x32xf32>
    %c0_4 = arith.constant 0 : index
    %c0_5 = arith.constant 0 : index
    %5 = vector.load %arg6[%c0_4, %c0_5] : memref<2x32xf32, #tpu.memory_space<vmem>>, vector<2x32xf32>
    %c0_6 = arith.constant 0 : index
    %c0_7 = arith.constant 0 : index
    %c0_8 = arith.constant 0 : index
    %6 = vector.load %arg2[%c0_6, %c0_7, %c0_8] : memref<8x2x128xbf16, #tpu.memory_space<vmem>>, vector<1x2x128xbf16>
    %7 = vector.shape_cast %6 : vector<1x2x128xbf16> to vector<2x128xbf16>
    %8 = arith.extf %7 : vector<2x128xbf16> to vector<2x128xf32>
    %9 = arith.truncf %4 : vector<2x32xf32> to vector<2x32xbf16>
    %cst = arith.constant dense<0.000000e+00> : vector<2x128xf32>
    %10 = tpu.matmul %9, %3, %cst {dimension_numbers = #tpu.dot_dimension_numbers<[1], [0], [0], [1], [0, 0, 1, 1], [], []>} : vector<2x32xbf16>, vector<32x128xbf16>, vector<2x128xf32> -> vector<2x128xf32>
    %11 = arith.addf %8, %10 : vector<2x128xf32>
    %12 = vector.extract_strided_slice %11 {offsets = [0, 0], sizes = [2, 32], strides = [1, 1]} : vector<2x128xf32> to vector<2x32xf32>
    %13 = arith.negf %12 : vector<2x32xf32>
    %14 = math.exp %13 : vector<2x32xf32>
    %cst_9 = arith.constant 1.000000e+00 : f32
    %15 = vector.broadcast %cst_9 : f32 to vector<2x32xf32>
    %16 = arith.addf %15, %14 : vector<2x32xf32>
    %17 = arith.divf %15, %16 : vector<2x32xf32>
    %18 = vector.extract_strided_slice %11 {offsets = [0, 32], sizes = [2, 32], strides = [1, 1]} : vector<2x128xf32> to vector<2x32xf32>
    %19 = arith.negf %18 : vector<2x32xf32>
    %20 = math.exp %19 : vector<2x32xf32>
    %cst_10 = arith.constant 1.000000e+00 : f32
    %21 = vector.broadcast %cst_10 : f32 to vector<2x32xf32>
    %22 = arith.addf %21, %20 : vector<2x32xf32>
    %23 = arith.divf %21, %22 : vector<2x32xf32>
    %24 = vector.extract_strided_slice %11 {offsets = [0, 64], sizes = [2, 32], strides = [1, 1]} : vector<2x128xf32> to vector<2x32xf32>
    %25 = math.tanh %24 : vector<2x32xf32>
    %26 = vector.extract_strided_slice %11 {offsets = [0, 96], sizes = [2, 32], strides = [1, 1]} : vector<2x128xf32> to vector<2x32xf32>
    %27 = arith.negf %26 : vector<2x32xf32>
    %28 = math.exp %27 : vector<2x32xf32>
    %cst_11 = arith.constant 1.000000e+00 : f32
    %29 = vector.broadcast %cst_11 : f32 to vector<2x32xf32>
    %30 = arith.addf %29, %28 : vector<2x32xf32>
    %31 = arith.divf %29, %30 : vector<2x32xf32>
    %32 = arith.mulf %23, %5 : vector<2x32xf32>
    %33 = arith.mulf %17, %25 : vector<2x32xf32>
    %34 = arith.addf %32, %33 : vector<2x32xf32>
    %35 = math.tanh %34 : vector<2x32xf32>
    %36 = arith.mulf %31, %35 : vector<2x32xf32>
    %37 = arith.truncf %36 : vector<2x32xf32> to vector<2x32xbf16>
    %c0_12 = arith.constant 0 : index
    %c0_13 = arith.constant 0 : index
    %c0_14 = arith.constant 0 : index
    %38 = vector.load %arg4[%c0_12, %c0_13, %c0_14] : memref<2x8x32xbf16, #tpu.memory_space<vmem>>, vector<2x1x32xbf16>
    %39 = vector.shape_cast %38 : vector<2x1x32xbf16> to vector<2x32xbf16>
    %40 = vector.shape_cast %37 : vector<2x32xbf16> to vector<2x1x32xbf16>
    tpu.vector_store %arg4[%c0_12, %c0_13, %c0_14], %40 {strides = array<i32>} : memref<2x8x32xbf16, #tpu.memory_space<vmem>>, vector<2x1x32xbf16>,
    %c1 = arith.constant 1 : index
    %c0_15 = arith.constant 0 : index
    %c0_16 = arith.constant 0 : index
    %41 = vector.load %arg2[%c1, %c0_15, %c0_16] : memref<8x2x128xbf16, #tpu.memory_space<vmem>>, vector<1x2x128xbf16>
    %42 = vector.shape_cast %41 : vector<1x2x128xbf16> to vector<2x128xbf16>
    %43 = arith.extf %42 : vector<2x128xbf16> to vector<2x128xf32>
    %44 = arith.truncf %36 : vector<2x32xf32> to vector<2x32xbf16>
    %cst_17 = arith.constant dense<0.000000e+00> : vector<2x128xf32>
    %45 = tpu.matmul %44, %3, %cst_17 {dimension_numbers = #tpu.dot_dimension_numbers<[1], [0], [0], [1], [0, 0, 1, 1], [], []>} : vector<2x32xbf16>, vector<32x128xbf16>, vector<2x128xf32> -> vector<2x128xf32>
    %46 = arith.addf %43, %45 : vector<2x128xf32>
    %47 = vector.extract_strided_slice %46 {offsets = [0, 0], sizes = [2, 32], strides = [1, 1]} : vector<2x128xf32> to vector<2x32xf32>
    %48 = arith.negf %47 : vector<2x32xf32>
    %49 = math.exp %48 : vector<2x32xf32>
    %cst_18 = arith.constant 1.000000e+00 : f32
    %50 = vector.broadcast %cst_18 : f32 to vector<2x32xf32>
    %51 = arith.addf %50, %49 : vector<2x32xf32>
    %52 = arith.divf %50, %51 : vector<2x32xf32>
    %53 = vector.extract_strided_slice %46 {offsets = [0, 32], sizes = [2, 32], strides = [1, 1]} : vector<2x128xf32> to vector<2x32xf32>
    %54 = arith.negf %53 : vector<2x32xf32>
    %55 = math.exp %54 : vector<2x32xf32>
    %cst_19 = arith.constant 1.000000e+00 : f32
    %56 = vector.broadcast %cst_19 : f32 to vector<2x32xf32>
    %57 = arith.addf %56, %55 : vector<2x32xf32>
    %58 = arith.divf %56, %57 : vector<2x32xf32>
    %59 = vector.extract_strided_slice %46 {offsets = [0, 64], sizes = [2, 32], strides = [1, 1]} : vector<2x128xf32> to vector<2x32xf32>
    %60 = math.tanh %59 : vector<2x32xf32>
    %61 = vector.extract_strided_slice %46 {offsets = [0, 96], sizes = [2, 32], strides = [1, 1]} : vector<2x128xf32> to vector<2x32xf32>
    %62 = arith.negf %61 : vector<2x32xf32>
    %63 = math.exp %62 : vector<2x32xf32>
    %cst_20 = arith.constant 1.000000e+00 : f32
    %64 = vector.broadcast %cst_20 : f32 to vector<2x32xf32>
    %65 = arith.addf %64, %63 : vector<2x32xf32>
    %66 = arith.divf %64, %65 : vector<2x32xf32>
    %67 = arith.mulf %58, %34 : vector<2x32xf32>
    %68 = arith.mulf %52, %60 : vector<2x32xf32>
    %69 = arith.addf %67, %68 : vector<2x32xf32>
    %70 = math.tanh %69 : vector<2x32xf32>
    %71 = arith.mulf %66, %70 : vector<2x32xf32>
    %72 = arith.truncf %71 : vector<2x32xf32> to vector<2x32xbf16>
    %c0_21 = arith.constant 0 : index
    %c1_22 = arith.constant 1 : index
    %c0_23 = arith.constant 0 : index
    %73 = vector.load %arg4[%c0_21, %c1_22, %c0_23] : memref<2x8x32xbf16, #tpu.memory_space<vmem>>, vector<2x1x32xbf16>
    %74 = vector.shape_cast %73 : vector<2x1x32xbf16> to vector<2x32xbf16>
    %75 = vector.shape_cast %72 : vector<2x32xbf16> to vector<2x1x32xbf16>
    tpu.vector_store %arg4[%c0_21, %c1_22, %c0_23], %75 {strides = array<i32>} : memref<2x8x32xbf16, #tpu.memory_space<vmem>>, vector<2x1x32xbf16>,
    %c2 = arith.constant 2 : index
    %c0_24 = arith.constant 0 : index
    %c0_25 = arith.constant 0 : index
    %76 = vector.load %arg2[%c2, %c0_24, %c0_25] : memref<8x2x128xbf16, #tpu.memory_space<vmem>>, vector<1x2x128xbf16>
    %77 = vector.shape_cast %76 : vector<1x2x128xbf16> to vector<2x128xbf16>
    %78 = arith.extf %77 : vector<2x128xbf16> to vector<2x128xf32>
    %79 = arith.truncf %71 : vector<2x32xf32> to vector<2x32xbf16>
    %cst_26 = arith.constant dense<0.000000e+00> : vector<2x128xf32>
    %80 = tpu.matmul %79, %3, %cst_26 {dimension_numbers = #tpu.dot_dimension_numbers<[1], [0], [0], [1], [0, 0, 1, 1], [], []>} : vector<2x32xbf16>, vector<32x128xbf16>, vector<2x128xf32> -> vector<2x128xf32>
    %81 = arith.addf %78, %80 : vector<2x128xf32>
    %82 = vector.extract_strided_slice %81 {offsets = [0, 0], sizes = [2, 32], strides = [1, 1]} : vector<2x128xf32> to vector<2x32xf32>
    %83 = arith.negf %82 : vector<2x32xf32>
    %84 = math.exp %83 : vector<2x32xf32>
    %cst_27 = arith.constant 1.000000e+00 : f32
    %85 = vector.broadcast %cst_27 : f32 to vector<2x32xf32>
    %86 = arith.addf %85, %84 : vector<2x32xf32>
    %87 = arith.divf %85, %86 : vector<2x32xf32>
    %88 = vector.extract_strided_slice %81 {offsets = [0, 32], sizes = [2, 32], strides = [1, 1]} : vector<2x128xf32> to vector<2x32xf32>
    %89 = arith.negf %88 : vector<2x32xf32>
    %90 = math.exp %89 : vector<2x32xf32>
    %cst_28 = arith.constant 1.000000e+00 : f32
    %91 = vector.broadcast %cst_28 : f32 to vector<2x32xf32>
    %92 = arith.addf %91, %90 : vector<2x32xf32>
    %93 = arith.divf %91, %92 : vector<2x32xf32>
    %94 = vector.extract_strided_slice %81 {offsets = [0, 64], sizes = [2, 32], strides = [1, 1]} : vector<2x128xf32> to vector<2x32xf32>
    %95 = math.tanh %94 : vector<2x32xf32>
    %96 = vector.extract_strided_slice %81 {offsets = [0, 96], sizes = [2, 32], strides = [1, 1]} : vector<2x128xf32> to vector<2x32xf32>
    %97 = arith.negf %96 : vector<2x32xf32>
    %98 = math.exp %97 : vector<2x32xf32>
    %cst_29 = arith.constant 1.000000e+00 : f32
    %99 = vector.broadcast %cst_29 : f32 to vector<2x32xf32>
    %100 = arith.addf %99, %98 : vector<2x32xf32>
    %101 = arith.divf %99, %100 : vector<2x32xf32>
    %102 = arith.mulf %93, %69 : vector<2x32xf32>
    %103 = arith.mulf %87, %95 : vector<2x32xf32>
    %104 = arith.addf %102, %103 : vector<2x32xf32>
    %105 = math.tanh %104 : vector<2x32xf32>
    %106 = arith.mulf %101, %105 : vector<2x32xf32>
    %107 = arith.truncf %106 : vector<2x32xf32> to vector<2x32xbf16>
    %c0_30 = arith.constant 0 : index
    %c2_31 = arith.constant 2 : index
    %c0_32 = arith.constant 0 : index
    %108 = vector.load %arg4[%c0_30, %c2_31, %c0_32] : memref<2x8x32xbf16, #tpu.memory_space<vmem>>, vector<2x1x32xbf16>
    %109 = vector.shape_cast %108 : vector<2x1x32xbf16> to vector<2x32xbf16>
    %110 = vector.shape_cast %107 : vector<2x32xbf16> to vector<2x1x32xbf16>
    tpu.vector_store %arg4[%c0_30, %c2_31, %c0_32], %110 {strides = array<i32>} : memref<2x8x32xbf16, #tpu.memory_space<vmem>>, vector<2x1x32xbf16>,
    %c3 = arith.constant 3 : index
    %c0_33 = arith.constant 0 : index
    %c0_34 = arith.constant 0 : index
    %111 = vector.load %arg2[%c3, %c0_33, %c0_34] : memref<8x2x128xbf16, #tpu.memory_space<vmem>>, vector<1x2x128xbf16>
    %112 = vector.shape_cast %111 : vector<1x2x128xbf16> to vector<2x128xbf16>
    %113 = arith.extf %112 : vector<2x128xbf16> to vector<2x128xf32>
    %114 = arith.truncf %106 : vector<2x32xf32> to vector<2x32xbf16>
    %cst_35 = arith.constant dense<0.000000e+00> : vector<2x128xf32>
    %115 = tpu.matmul %114, %3, %cst_35 {dimension_numbers = #tpu.dot_dimension_numbers<[1], [0], [0], [1], [0, 0, 1, 1], [], []>} : vector<2x32xbf16>, vector<32x128xbf16>, vector<2x128xf32> -> vector<2x128xf32>
    %116 = arith.addf %113, %115 : vector<2x128xf32>
    %117 = vector.extract_strided_slice %116 {offsets = [0, 0], sizes = [2, 32], strides = [1, 1]} : vector<2x128xf32> to vector<2x32xf32>
    %118 = arith.negf %117 : vector<2x32xf32>
    %119 = math.exp %118 : vector<2x32xf32>
    %cst_36 = arith.constant 1.000000e+00 : f32
    %120 = vector.broadcast %cst_36 : f32 to vector<2x32xf32>
    %121 = arith.addf %120, %119 : vector<2x32xf32>
    %122 = arith.divf %120, %121 : vector<2x32xf32>
    %123 = vector.extract_strided_slice %116 {offsets = [0, 32], sizes = [2, 32], strides = [1, 1]} : vector<2x128xf32> to vector<2x32xf32>
    %124 = arith.negf %123 : vector<2x32xf32>
    %125 = math.exp %124 : vector<2x32xf32>
    %cst_37 = arith.constant 1.000000e+00 : f32
    %126 = vector.broadcast %cst_37 : f32 to vector<2x32xf32>
    %127 = arith.addf %126, %125 : vector<2x32xf32>
    %128 = arith.divf %126, %127 : vector<2x32xf32>
    %129 = vector.extract_strided_slice %116 {offsets = [0, 64], sizes = [2, 32], strides = [1, 1]} : vector<2x128xf32> to vector<2x32xf32>
    %130 = math.tanh %129 : vector<2x32xf32>
    %131 = vector.extract_strided_slice %116 {offsets = [0, 96], sizes = [2, 32], strides = [1, 1]} : vector<2x128xf32> to vector<2x32xf32>
    %132 = arith.negf %131 : vector<2x32xf32>
    %133 = math.exp %132 : vector<2x32xf32>
    %cst_38 = arith.constant 1.000000e+00 : f32
    %134 = vector.broadcast %cst_38 : f32 to vector<2x32xf32>
    %135 = arith.addf %134, %133 : vector<2x32xf32>
    %136 = arith.divf %134, %135 : vector<2x32xf32>
    %137 = arith.mulf %128, %104 : vector<2x32xf32>
    %138 = arith.mulf %122, %130 : vector<2x32xf32>
    %139 = arith.addf %137, %138 : vector<2x32xf32>
    %140 = math.tanh %139 : vector<2x32xf32>
    %141 = arith.mulf %136, %140 : vector<2x32xf32>
    %142 = arith.truncf %141 : vector<2x32xf32> to vector<2x32xbf16>
    %c0_39 = arith.constant 0 : index
    %c3_40 = arith.constant 3 : index
    %c0_41 = arith.constant 0 : index
    %143 = vector.load %arg4[%c0_39, %c3_40, %c0_41] : memref<2x8x32xbf16, #tpu.memory_space<vmem>>, vector<2x1x32xbf16>
    %144 = vector.shape_cast %143 : vector<2x1x32xbf16> to vector<2x32xbf16>
    %145 = vector.shape_cast %142 : vector<2x32xbf16> to vector<2x1x32xbf16>
    tpu.vector_store %arg4[%c0_39, %c3_40, %c0_41], %145 {strides = array<i32>} : memref<2x8x32xbf16, #tpu.memory_space<vmem>>, vector<2x1x32xbf16>,
    %c4 = arith.constant 4 : index
    %c0_42 = arith.constant 0 : index
    %c0_43 = arith.constant 0 : index
    %146 = vector.load %arg2[%c4, %c0_42, %c0_43] : memref<8x2x128xbf16, #tpu.memory_space<vmem>>, vector<1x2x128xbf16>
    %147 = vector.shape_cast %146 : vector<1x2x128xbf16> to vector<2x128xbf16>
    %148 = arith.extf %147 : vector<2x128xbf16> to vector<2x128xf32>
    %149 = arith.truncf %141 : vector<2x32xf32> to vector<2x32xbf16>
    %cst_44 = arith.constant dense<0.000000e+00> : vector<2x128xf32>
    %150 = tpu.matmul %149, %3, %cst_44 {dimension_numbers = #tpu.dot_dimension_numbers<[1], [0], [0], [1], [0, 0, 1, 1], [], []>} : vector<2x32xbf16>, vector<32x128xbf16>, vector<2x128xf32> -> vector<2x128xf32>
    %151 = arith.addf %148, %150 : vector<2x128xf32>
    %152 = vector.extract_strided_slice %151 {offsets = [0, 0], sizes = [2, 32], strides = [1, 1]} : vector<2x128xf32> to vector<2x32xf32>
    %153 = arith.negf %152 : vector<2x32xf32>
    %154 = math.exp %153 : vector<2x32xf32>
    %cst_45 = arith.constant 1.000000e+00 : f32
    %155 = vector.broadcast %cst_45 : f32 to vector<2x32xf32>
    %156 = arith.addf %155, %154 : vector<2x32xf32>
    %157 = arith.divf %155, %156 : vector<2x32xf32>
    %158 = vector.extract_strided_slice %151 {offsets = [0, 32], sizes = [2, 32], strides = [1, 1]} : vector<2x128xf32> to vector<2x32xf32>
    %159 = arith.negf %158 : vector<2x32xf32>
    %160 = math.exp %159 : vector<2x32xf32>
    %cst_46 = arith.constant 1.000000e+00 : f32
    %161 = vector.broadcast %cst_46 : f32 to vector<2x32xf32>
    %162 = arith.addf %161, %160 : vector<2x32xf32>
    %163 = arith.divf %161, %162 : vector<2x32xf32>
    %164 = vector.extract_strided_slice %151 {offsets = [0, 64], sizes = [2, 32], strides = [1, 1]} : vector<2x128xf32> to vector<2x32xf32>
    %165 = math.tanh %164 : vector<2x32xf32>
    %166 = vector.extract_strided_slice %151 {offsets = [0, 96], sizes = [2, 32], strides = [1, 1]} : vector<2x128xf32> to vector<2x32xf32>
    %167 = arith.negf %166 : vector<2x32xf32>
    %168 = math.exp %167 : vector<2x32xf32>
    %cst_47 = arith.constant 1.000000e+00 : f32
    %169 = vector.broadcast %cst_47 : f32 to vector<2x32xf32>
    %170 = arith.addf %169, %168 : vector<2x32xf32>
    %171 = arith.divf %169, %170 : vector<2x32xf32>
    %172 = arith.mulf %163, %139 : vector<2x32xf32>
    %173 = arith.mulf %157, %165 : vector<2x32xf32>
    %174 = arith.addf %172, %173 : vector<2x32xf32>
    %175 = math.tanh %174 : vector<2x32xf32>
    %176 = arith.mulf %171, %175 : vector<2x32xf32>
    %177 = arith.truncf %176 : vector<2x32xf32> to vector<2x32xbf16>
    %c0_48 = arith.constant 0 : index
    %c4_49 = arith.constant 4 : index
    %c0_50 = arith.constant 0 : index
    %178 = vector.load %arg4[%c0_48, %c4_49, %c0_50] : memref<2x8x32xbf16, #tpu.memory_space<vmem>>, vector<2x1x32xbf16>
    %179 = vector.shape_cast %178 : vector<2x1x32xbf16> to vector<2x32xbf16>
    %180 = vector.shape_cast %177 : vector<2x32xbf16> to vector<2x1x32xbf16>
    tpu.vector_store %arg4[%c0_48, %c4_49, %c0_50], %180 {strides = array<i32>} : memref<2x8x32xbf16, #tpu.memory_space<vmem>>, vector<2x1x32xbf16>,
    %c5 = arith.constant 5 : index
    %c0_51 = arith.constant 0 : index
    %c0_52 = arith.constant 0 : index
    %181 = vector.load %arg2[%c5, %c0_51, %c0_52] : memref<8x2x128xbf16, #tpu.memory_space<vmem>>, vector<1x2x128xbf16>
    %182 = vector.shape_cast %181 : vector<1x2x128xbf16> to vector<2x128xbf16>
    %183 = arith.extf %182 : vector<2x128xbf16> to vector<2x128xf32>
    %184 = arith.truncf %176 : vector<2x32xf32> to vector<2x32xbf16>
    %cst_53 = arith.constant dense<0.000000e+00> : vector<2x128xf32>
    %185 = tpu.matmul %184, %3, %cst_53 {dimension_numbers = #tpu.dot_dimension_numbers<[1], [0], [0], [1], [0, 0, 1, 1], [], []>} : vector<2x32xbf16>, vector<32x128xbf16>, vector<2x128xf32> -> vector<2x128xf32>
    %186 = arith.addf %183, %185 : vector<2x128xf32>
    %187 = vector.extract_strided_slice %186 {offsets = [0, 0], sizes = [2, 32], strides = [1, 1]} : vector<2x128xf32> to vector<2x32xf32>
    %188 = arith.negf %187 : vector<2x32xf32>
    %189 = math.exp %188 : vector<2x32xf32>
    %cst_54 = arith.constant 1.000000e+00 : f32
    %190 = vector.broadcast %cst_54 : f32 to vector<2x32xf32>
    %191 = arith.addf %190, %189 : vector<2x32xf32>
    %192 = arith.divf %190, %191 : vector<2x32xf32>
    %193 = vector.extract_strided_slice %186 {offsets = [0, 32], sizes = [2, 32], strides = [1, 1]} : vector<2x128xf32> to vector<2x32xf32>
    %194 = arith.negf %193 : vector<2x32xf32>
    %195 = math.exp %194 : vector<2x32xf32>
    %cst_55 = arith.constant 1.000000e+00 : f32
    %196 = vector.broadcast %cst_55 : f32 to vector<2x32xf32>
    %197 = arith.addf %196, %195 : vector<2x32xf32>
    %198 = arith.divf %196, %197 : vector<2x32xf32>
    %199 = vector.extract_strided_slice %186 {offsets = [0, 64], sizes = [2, 32], strides = [1, 1]} : vector<2x128xf32> to vector<2x32xf32>
    %200 = math.tanh %199 : vector<2x32xf32>
    %201 = vector.extract_strided_slice %186 {offsets = [0, 96], sizes = [2, 32], strides = [1, 1]} : vector<2x128xf32> to vector<2x32xf32>
    %202 = arith.negf %201 : vector<2x32xf32>
    %203 = math.exp %202 : vector<2x32xf32>
    %cst_56 = arith.constant 1.000000e+00 : f32
    %204 = vector.broadcast %cst_56 : f32 to vector<2x32xf32>
    %205 = arith.addf %204, %203 : vector<2x32xf32>
    %206 = arith.divf %204, %205 : vector<2x32xf32>
    %207 = arith.mulf %198, %174 : vector<2x32xf32>
    %208 = arith.mulf %192, %200 : vector<2x32xf32>
    %209 = arith.addf %207, %208 : vector<2x32xf32>
    %210 = math.tanh %209 : vector<2x32xf32>
    %211 = arith.mulf %206, %210 : vector<2x32xf32>
    %212 = arith.truncf %211 : vector<2x32xf32> to vector<2x32xbf16>
    %c0_57 = arith.constant 0 : index
    %c5_58 = arith.constant 5 : index
    %c0_59 = arith.constant 0 : index
    %213 = vector.load %arg4[%c0_57, %c5_58, %c0_59] : memref<2x8x32xbf16, #tpu.memory_space<vmem>>, vector<2x1x32xbf16>
    %214 = vector.shape_cast %213 : vector<2x1x32xbf16> to vector<2x32xbf16>
    %215 = vector.shape_cast %212 : vector<2x32xbf16> to vector<2x1x32xbf16>
    tpu.vector_store %arg4[%c0_57, %c5_58, %c0_59], %215 {strides = array<i32>} : memref<2x8x32xbf16, #tpu.memory_space<vmem>>, vector<2x1x32xbf16>,
    %c6 = arith.constant 6 : index
    %c0_60 = arith.constant 0 : index
    %c0_61 = arith.constant 0 : index
    %216 = vector.load %arg2[%c6, %c0_60, %c0_61] : memref<8x2x128xbf16, #tpu.memory_space<vmem>>, vector<1x2x128xbf16>
    %217 = vector.shape_cast %216 : vector<1x2x128xbf16> to vector<2x128xbf16>
    %218 = arith.extf %217 : vector<2x128xbf16> to vector<2x128xf32>
    %219 = arith.truncf %211 : vector<2x32xf32> to vector<2x32xbf16>
    %cst_62 = arith.constant dense<0.000000e+00> : vector<2x128xf32>
    %220 = tpu.matmul %219, %3, %cst_62 {dimension_numbers = #tpu.dot_dimension_numbers<[1], [0], [0], [1], [0, 0, 1, 1], [], []>} : vector<2x32xbf16>, vector<32x128xbf16>, vector<2x128xf32> -> vector<2x128xf32>
    %221 = arith.addf %218, %220 : vector<2x128xf32>
    %222 = vector.extract_strided_slice %221 {offsets = [0, 0], sizes = [2, 32], strides = [1, 1]} : vector<2x128xf32> to vector<2x32xf32>
    %223 = arith.negf %222 : vector<2x32xf32>
    %224 = math.exp %223 : vector<2x32xf32>
    %cst_63 = arith.constant 1.000000e+00 : f32
    %225 = vector.broadcast %cst_63 : f32 to vector<2x32xf32>
    %226 = arith.addf %225, %224 : vector<2x32xf32>
    %227 = arith.divf %225, %226 : vector<2x32xf32>
    %228 = vector.extract_strided_slice %221 {offsets = [0, 32], sizes = [2, 32], strides = [1, 1]} : vector<2x128xf32> to vector<2x32xf32>
    %229 = arith.negf %228 : vector<2x32xf32>
    %230 = math.exp %229 : vector<2x32xf32>
    %cst_64 = arith.constant 1.000000e+00 : f32
    %231 = vector.broadcast %cst_64 : f32 to vector<2x32xf32>
    %232 = arith.addf %231, %230 : vector<2x32xf32>
    %233 = arith.divf %231, %232 : vector<2x32xf32>
    %234 = vector.extract_strided_slice %221 {offsets = [0, 64], sizes = [2, 32], strides = [1, 1]} : vector<2x128xf32> to vector<2x32xf32>
    %235 = math.tanh %234 : vector<2x32xf32>
    %236 = vector.extract_strided_slice %221 {offsets = [0, 96], sizes = [2, 32], strides = [1, 1]} : vector<2x128xf32> to vector<2x32xf32>
    %237 = arith.negf %236 : vector<2x32xf32>
    %238 = math.exp %237 : vector<2x32xf32>
    %cst_65 = arith.constant 1.000000e+00 : f32
    %239 = vector.broadcast %cst_65 : f32 to vector<2x32xf32>
    %240 = arith.addf %239, %238 : vector<2x32xf32>
    %241 = arith.divf %239, %240 : vector<2x32xf32>
    %242 = arith.mulf %233, %209 : vector<2x32xf32>
    %243 = arith.mulf %227, %235 : vector<2x32xf32>
    %244 = arith.addf %242, %243 : vector<2x32xf32>
    %245 = math.tanh %244 : vector<2x32xf32>
    %246 = arith.mulf %241, %245 : vector<2x32xf32>
    %247 = arith.truncf %246 : vector<2x32xf32> to vector<2x32xbf16>
    %c0_66 = arith.constant 0 : index
    %c6_67 = arith.constant 6 : index
    %c0_68 = arith.constant 0 : index
    %248 = vector.load %arg4[%c0_66, %c6_67, %c0_68] : memref<2x8x32xbf16, #tpu.memory_space<vmem>>, vector<2x1x32xbf16>
    %249 = vector.shape_cast %248 : vector<2x1x32xbf16> to vector<2x32xbf16>
    %250 = vector.shape_cast %247 : vector<2x32xbf16> to vector<2x1x32xbf16>
    tpu.vector_store %arg4[%c0_66, %c6_67, %c0_68], %250 {strides = array<i32>} : memref<2x8x32xbf16, #tpu.memory_space<vmem>>, vector<2x1x32xbf16>,
    %c7 = arith.constant 7 : index
    %c0_69 = arith.constant 0 : index
    %c0_70 = arith.constant 0 : index
    %251 = vector.load %arg2[%c7, %c0_69, %c0_70] : memref<8x2x128xbf16, #tpu.memory_space<vmem>>, vector<1x2x128xbf16>
    %252 = vector.shape_cast %251 : vector<1x2x128xbf16> to vector<2x128xbf16>
    %253 = arith.extf %252 : vector<2x128xbf16> to vector<2x128xf32>
    %254 = arith.truncf %246 : vector<2x32xf32> to vector<2x32xbf16>
    %cst_71 = arith.constant dense<0.000000e+00> : vector<2x128xf32>
    %255 = tpu.matmul %254, %3, %cst_71 {dimension_numbers = #tpu.dot_dimension_numbers<[1], [0], [0], [1], [0, 0, 1, 1], [], []>} : vector<2x32xbf16>, vector<32x128xbf16>, vector<2x128xf32> -> vector<2x128xf32>
    %256 = arith.addf %253, %255 : vector<2x128xf32>
    %257 = vector.extract_strided_slice %256 {offsets = [0, 0], sizes = [2, 32], strides = [1, 1]} : vector<2x128xf32> to vector<2x32xf32>
    %258 = arith.negf %257 : vector<2x32xf32>
    %259 = math.exp %258 : vector<2x32xf32>
    %cst_72 = arith.constant 1.000000e+00 : f32
    %260 = vector.broadcast %cst_72 : f32 to vector<2x32xf32>
    %261 = arith.addf %260, %259 : vector<2x32xf32>
    %262 = arith.divf %260, %261 : vector<2x32xf32>
    %263 = vector.extract_strided_slice %256 {offsets = [0, 32], sizes = [2, 32], strides = [1, 1]} : vector<2x128xf32> to vector<2x32xf32>
    %264 = arith.negf %263 : vector<2x32xf32>
    %265 = math.exp %264 : vector<2x32xf32>
    %cst_73 = arith.constant 1.000000e+00 : f32
    %266 = vector.broadcast %cst_73 : f32 to vector<2x32xf32>
    %267 = arith.addf %266, %265 : vector<2x32xf32>
    %268 = arith.divf %266, %267 : vector<2x32xf32>
    %269 = vector.extract_strided_slice %256 {offsets = [0, 64], sizes = [2, 32], strides = [1, 1]} : vector<2x128xf32> to vector<2x32xf32>
    %270 = math.tanh %269 : vector<2x32xf32>
    %271 = vector.extract_strided_slice %256 {offsets = [0, 96], sizes = [2, 32], strides = [1, 1]} : vector<2x128xf32> to vector<2x32xf32>
    %272 = arith.negf %271 : vector<2x32xf32>
    %273 = math.exp %272 : vector<2x32xf32>
    %cst_74 = arith.constant 1.000000e+00 : f32
    %274 = vector.broadcast %cst_74 : f32 to vector<2x32xf32>
    %275 = arith.addf %274, %273 : vector<2x32xf32>
    %276 = arith.divf %274, %275 : vector<2x32xf32>
    %277 = arith.mulf %268, %244 : vector<2x32xf32>
    %278 = arith.mulf %262, %270 : vector<2x32xf32>
    %279 = arith.addf %277, %278 : vector<2x32xf32>
    %280 = math.tanh %279 : vector<2x32xf32>
    %281 = arith.mulf %276, %280 : vector<2x32xf32>
    %282 = arith.truncf %281 : vector<2x32xf32> to vector<2x32xbf16>
    %c0_75 = arith.constant 0 : index
    %c7_76 = arith.constant 7 : index
    %c0_77 = arith.constant 0 : index
    %283 = vector.load %arg4[%c0_75, %c7_76, %c0_77] : memref<2x8x32xbf16, #tpu.memory_space<vmem>>, vector<2x1x32xbf16>
    %284 = vector.shape_cast %283 : vector<2x1x32xbf16> to vector<2x32xbf16>
    %285 = vector.shape_cast %282 : vector<2x32xbf16> to vector<2x1x32xbf16>
    tpu.vector_store %arg4[%c0_75, %c7_76, %c0_77], %285 {strides = array<i32>} : memref<2x8x32xbf16, #tpu.memory_space<vmem>>, vector<2x1x32xbf16>,
    %c0_78 = arith.constant 0 : index
    %c0_79 = arith.constant 0 : index
    %286 = vector.load %arg5[%c0_78, %c0_79] : memref<2x32xf32, #tpu.memory_space<vmem>>, vector<2x32xf32>
    tpu.vector_store %arg5[%c0_78, %c0_79], %281 {strides = array<i32>} : memref<2x32xf32, #tpu.memory_space<vmem>>, vector<2x32xf32>,
    %c0_80 = arith.constant 0 : index
    %c0_81 = arith.constant 0 : index
    %287 = vector.load %arg6[%c0_80, %c0_81] : memref<2x32xf32, #tpu.memory_space<vmem>>, vector<2x32xf32>
    tpu.vector_store %arg6[%c0_80, %c0_81], %279 {strides = array<i32>} : memref<2x32xf32, #tpu.memory_space<vmem>>, vector<2x32xf32>,
    return
  }
  func.func @transform_0(%arg0: i32, %arg1: i32) -> (i32, i32, i32) {
    %c0_i32 = arith.constant 0 : i32
    %c0_i32_0 = arith.constant 0 : i32
    return %arg1, %arg0, %c0_i32 : i32, i32, i32
  }
  func.func @transform_1(%arg0: i32, %arg1: i32) -> (i32, i32) {
    %c0_i32 = arith.constant 0 : i32
    %c0_i32_0 = arith.constant 0 : i32
    %c0_i32_1 = arith.constant 0 : i32
    return %c0_i32, %c0_i32_0 : i32, i32
  }
  func.func @transform_2(%arg0: i32, %arg1: i32) -> (i32, i32, i32) {
    %c0_i32 = arith.constant 0 : i32
    %c0_i32_0 = arith.constant 0 : i32
    return %arg0, %arg1, %c0_i32 : i32, i32, i32
  }
}

</mosaic_0001>

<bundles_post_ra>
// kernel: tpu_custom_call.1
= control target key start
LH: loop header
LB: loop body
LE: loop exit
PB: predicated region body
PF: predicated region fallthrough
CT: control target
= control target key end

     0   :  { %7 = vsyncpa [#allocation5], 0  ;;  %s1301_s0 = inlined_call_operand.hbm [shape: bf16[8,2,128], index: 0, kind: input, shape index: {}]   ;;  %s1302_s1 = inlined_call_operand.hbm [shape: bf16[32,128], index: 1, kind: input, shape index: {}]   ;;  %s1303_s2 = inlined_call_operand.hbm [shape: bf16[2,8,32], index: 2, kind: output, shape index: {}]  }
   0x1   :  { %8 = vsyncpa [#allocation8], 0 }
   0x2   :  { %9 = vsyncpa [#allocation6], 0  ;;  %s14_s11 = sshll.u32 %s1301_s0, 4  ;;  %s1050_s12 = smov [#allocation4]   ;;  %s15_s11 = int_to_ptr.hbm [resolvable:$true] %s14_s11 }
   0x3   :  { %s16_s13 = sshll.u32 %s1050_s12, 4  ;;  %s27_s16 = sshll.u32 %s1302_s1, 4  ;;  %s17_s13 = int_to_ptr.vmem [resolvable:$true] %s16_s13  ;;  %s28_s16 = int_to_ptr.hbm [resolvable:$true] %s27_s16 }
   0x4   :  { %s1051_s17 = smov 16   ;;  %s1052_s18 = smov 1  }
   0x5   :  { %22 = dma.hbm_to_vmem [thread:$0]  %s15_s11, 128, %s17_s13, [#allocation5], %s1051_s17, %s1051_s17, %s1052_s18  }
   0x6   :  { %s1053_s19 = smov [#allocation7]   ;;  %s1054_s21 = smov 64  }
   0x7   :  { %s29_s20 = sshll.u32 %s1053_s19, 4  ;;  %s1055_s22 = smov 4   ;;  %s30_s20 = int_to_ptr.vmem [resolvable:$true] %s29_s20 }
   0x8   :  { %35 = dma.hbm_to_vmem [thread:$0]  %s28_s16, 256, %s30_s20, [#allocation8], %s1054_s21, %s1054_s21, %s1055_s22  }
   0x9   :  { %1044 = dma.done.wait [#allocation5], 128  }
   0xa   :  { %1045 = vsyncadd [#allocation5], 4294967168 }
   0xb   :  { %1046 = dma.done.wait [#allocation8], 256  }
   0xc   :  { %1047 = vsyncadd [#allocation8], 4294967040  ;;  %vm49_vm0 = vcmask 254976   ;;  %v1056_v0 = vmov 0.0   ;;  %v896_v1 = vld [vmem:[#allocation7 + $0x8] sm:$0xff]  ;;  %v895_v2 = vld [vmem:[#allocation7] sm:$0xff] }
   0xd   :  { %50 = vst.msk [vmem:[#allocation2] sm:$0x3] %vm49_vm0, %v1056_v0  ;;  %83 = vmatpush.bf16.msra.mxu0 %v896_v1  ;;  %183 = vmatpush.bf16.msra.mxu1 %v896_v1  ;;  %vm73_vm1 = vcmask 261120   ;;  %v58_v5 = vld [vmem:[#allocation4] sm:$0x1]  ;;  %s1057_s0 = smov 32  }
   0xe   :  { %51 = vst.msk [vmem:[#allocation3] sm:$0x3] %vm49_vm0, %v1056_v0  ;;  %277 = vmatpush.bf16.msra.mxu2 %v896_v1  ;;  %372 = vmatpush.bf16.msra.mxu3 %v896_v1  ;;  %v59_v6 = vunpack.c.l.bf16 %v58_v5  ;;  %v168_v38 = vld [vmem:[#allocation4 + $0x1] sm:$0x1]  ;;  %v262_v5 = vld [vmem:[#allocation4 + $0x2] sm:$0x1] }
   0xf   :  { %v169_v39 = vunpack.c.l.bf16 %v168_v38  ;;  %s1059_s1 = smov 96   ;;  %s1060_s23 = smov [#allocation9]  }
  0x10   :  { %s847_s24 = sshll.u32 %s1060_s23, 4  ;;  %s849_s27 = sshll.u32 %s1303_s2, 4  ;;  %s848_s24 = int_to_ptr.vmem [resolvable:$true] %s847_s24  ;;  %s850_s27 = int_to_ptr.hbm [resolvable:$true] %s849_s27 }
  0x11   :  { %84 = vmatpush.bf16.msra.mxu0 %v895_v2  ;;  %184 = vmatpush.bf16.msra.mxu1 %v895_v2 }
  0x12   :  { %278 = vmatpush.bf16.msra.mxu2 %v895_v2  ;;  %373 = vmatpush.bf16.msra.mxu3 %v895_v2 }
  0x14   :  { %v56_v3 = vld [vmem:[#allocation2] sm:$0x3] }
  0x15   :  { %v60_v4 = vpack.c.bf16 %v56_v3, %v56_v3  ;;  %466 = vmatpush.bf16.msrb.mxu0 %v896_v1  ;;  %561 = vmatpush.bf16.msrb.mxu1 %v896_v1  ;;  %v57_v11 = vld [vmem:[#allocation3] sm:$0x3] }
  0x16   :  { %655 = vmatpush.bf16.msrb.mxu2 %v896_v1  ;;  %750 = vmatpush.bf16.msrb.mxu3 %v896_v1 }
  0x17   :  { %871 = vmatmul.msk.bf16.vlgmr.msra.gmra.mxu0 %vm73_vm1, %v60_v4 }
  0x19   :  { %467 = vmatpush.bf16.msrb.mxu0 %v895_v2  ;;  %562 = vmatpush.bf16.msrb.mxu1 %v895_v2 }
  0x1a   :  { %656 = vmatpush.bf16.msrb.mxu2 %v895_v2  ;;  %751 = vmatpush.bf16.msrb.mxu3 %v895_v2 }
  0x94   :  { %v86_v7 = vpop.f32.mrf.mxu0 }
  0x95   :  { %v90_v8 = vadd.f32 %v86_v7, %v59_v6  ;;  %v263_v6 = vunpack.c.l.bf16 %v262_v5  ;;  %v451_v5 = vld [vmem:[#allocation4 + $0x4] sm:$0x1] }
  0x97   :  { %908 = vtanh.f32 %v90_v8  ;;  %v872_v12 = vmul.f32 -1.442695, %v90_v8 }
  0x99   :  { %910 = vpow2.f32 %v872_v12 }
  0x9c   :  { %v88_v9 = vpop.f32.mrf.mxu0 }
  0x9d   :  { %v909_v10 = vpop.eup %908 }
  0x9e   :  { %117 = vrot.lane.b32.xlu0 %v909_v10, %s1054_s21 }
  0x9f   :  { %v911_v13 = vpop.eup %910 }
  0xa0   :  { %v94_v14 = vadd.f32 1.0, %v911_v13 }
  0xa2   :  { %912 = vrcp.f32 %v94_v14  ;;  %v106_v20 = vand.u32 2147483648, %v94_v14  ;;  %vm100_vm3 = vweird.f32 %v94_v14  ;;  %v104_v21 = vand.u32 2147483647, %v94_v14 }
  0xa4   :  { %v107_v23 = vor.u32 1.1754944e-38, %v106_v20  ;;  %vm105_vm5 = vcmp.eq.f32.partialorder %v104_v21, 8.507059e+37 }
  0xa6   :  { %112 = vrot.lane.b32.xlu0 %v57_v11, %s1057_s0 }
  0xa8   :  { %v913_v15 = vpop.eup %912 }
  0xa9   :  { %v96_v16 = vmul.f32 %v913_v15, %v94_v14  ;;  %vm101_vm2 = vweird.f32 %v913_v15 }
  0xaa   :  { %vm102_vm4 = vmor %vm100_vm3, %vm101_vm2 }
  0xab   :  { %v97_v17 = vsub.f32 1.0, %v96_v16 }
  0xad   :  { %v98_v18 = vmul.f32 %v913_v15, %v97_v17 }
  0xaf   :  { %v99_v19 = vadd.f32 %v913_v15, %v98_v18 }
  0xb1   :  { %v103_v22 = vsel %vm102_vm4, %v913_v15, %v99_v19 }
  0xb2   :  { %v108_v25 = vsel %vm105_vm5, %v107_v23, %v103_v22 }
 0x110   :  { %v118_v24 = vpop.permute.xlu0 %117 }
 0x111   :  { %v120_v26 = vmul.f32 %v118_v24, %v108_v25 }
 0x113   :  { %122 = vrot.lane.b32.xlu1 %v120_v26, %s1057_s0 }
 0x118   :  { %v113_v27 = vpop.permute.xlu0 %112 }
 0x119   :  { %v115_v28 = vmul.f32 %v113_v27, %v108_v25 }
 0x185   :  { %v123_v29 = vpop.permute.xlu1 %122 }
 0x186   :  { %v125_v30 = vadd.f32 %v123_v29, %v115_v28 }
 0x188   :  { %914 = vtanh.f32 %v125_v30 }
 0x18e   :  { %v915_v31 = vpop.eup %914 }
 0x18f   :  { %128 = vrot.lane.b32.xlu1 %v915_v31, %s1054_s21 }
 0x201   :  { %v129_v32 = vpop.permute.xlu1 %128 }
 0x202   :  { %v131_v33 = vmul.f32 %v129_v32, %v108_v25 }
 0x204   :  { %v1092_v34 = vpack.c.bf16 %v131_v33, %v131_v33 }
 0x206   :  { %v170_v35 = vunpack.c.l.b16 %v1092_v34 }
 0x208   :  { %v171_v36 = vpack.c.b16 %v170_v35, %v170_v35 }
 0x20a   :  { %172 = vrot.lane.b32.xlu2 %v171_v36, %s1057_s0 }
 0x264   :  { %v173_v37 = vpop.permute.xlu2 %172 }
 0x265   :  { %874 = vmatmul.msk.bf16.vlgmr.msra.gmra.mxu1 %vm73_vm1, %v173_v37  ;;  %v357_v37 = vld [vmem:[#allocation4 + $0x3] sm:$0x1] }
 0x266   :  { %v358_v38 = vunpack.c.l.bf16 %v357_v37 }
 0x2e2   :  { %v186_v40 = vpop.f32.mrf.mxu1 }
 0x2e3   :  { %v190_v41 = vadd.f32 %v186_v40, %v169_v39 }
 0x2e5   :  { %916 = vtanh.f32 %v190_v41  ;;  %v875_v44 = vmul.f32 -1.442695, %v190_v41 }
 0x2e7   :  { %918 = vpow2.f32 %v875_v44 }
 0x2ea   :  { %v188_v42 = vpop.f32.mrf.mxu1 }
 0x2eb   :  { %v917_v43 = vpop.eup %916 }
 0x2ec   :  { %213 = vrot.lane.b32.xlu2 %v917_v43, %s1054_s21 }
 0x2ed   :  { %v919_v45 = vpop.eup %918 }
 0x2ee   :  { %v194_v46 = vadd.f32 1.0, %v919_v45 }
 0x2f0   :  { %920 = vrcp.f32 %v194_v46  ;;  %v206_v52 = vand.u32 2147483648, %v194_v46  ;;  %vm200_vm7 = vweird.f32 %v194_v46  ;;  %v204_v53 = vand.u32 2147483647, %v194_v46 }
 0x2f2   :  { %v207_v55 = vor.u32 1.1754944e-38, %v206_v52  ;;  %vm205_vm9 = vcmp.eq.f32.partialorder %v204_v53, 8.507059e+37 }
 0x2f6   :  { %v921_v47 = vpop.eup %920 }
 0x2f7   :  { %v196_v48 = vmul.f32 %v921_v47, %v194_v46  ;;  %vm201_vm6 = vweird.f32 %v921_v47 }
 0x2f8   :  { %vm202_vm8 = vmor %vm200_vm7, %vm201_vm6 }
 0x2f9   :  { %v197_v49 = vsub.f32 1.0, %v196_v48 }
 0x2fb   :  { %v198_v50 = vmul.f32 %v921_v47, %v197_v49 }
 0x2fd   :  { %v199_v51 = vadd.f32 %v921_v47, %v198_v50 }
 0x2ff   :  { %v203_v54 = vsel %vm202_vm8, %v921_v47, %v199_v51 }
 0x300   :  { %v208_v57 = vsel %vm205_vm9, %v207_v55, %v203_v54 }
 0x301   :  { %v211_v59 = vmul.f32 %v208_v57, %v125_v30 }
 0x346   :  { %v214_v56 = vpop.permute.xlu2 %213 }
 0x347   :  { %v216_v58 = vmul.f32 %v214_v56, %v208_v57 }
 0x349   :  { %218 = vrot.lane.b32.xlu0 %v216_v58, %s1057_s0 }
 0x3bb   :  { %v219_v60 = vpop.permute.xlu0 %218 }
 0x3bc   :  { %v221_v61 = vadd.f32 %v219_v60, %v211_v59 }
 0x3be   :  { %922 = vtanh.f32 %v221_v61 }
 0x3c4   :  { %v923_v62 = vpop.eup %922 }
 0x3c5   :  { %224 = vrot.lane.b32.xlu1 %v923_v62, %s1054_s21 }
 0x437   :  { %v225_v63 = vpop.permute.xlu1 %224 }
 0x438   :  { %v227_v0 = vmul.f32 %v225_v63, %v208_v57 }
 0x43a   :  { %v1100_v1 = vpack.c.bf16 %v227_v0, %v227_v0 }
 0x43c   :  { %v264_v2 = vunpack.c.l.b16 %v1100_v1 }
 0x43e   :  { %v265_v3 = vpack.c.b16 %v264_v2, %v264_v2 }
 0x440   :  { %266 = vrot.lane.b32.xlu2 %v265_v3, %s1057_s0 }
 0x49a   :  { %v267_v4 = vpop.permute.xlu2 %266 }
 0x49b   :  { %877 = vmatmul.msk.bf16.vlgmr.msra.gmra.mxu2 %vm73_vm1, %v267_v4 }
 0x51e   :  { %v280_v7 = vpop.f32.mrf.mxu2 }
 0x51f   :  { %v284_v8 = vadd.f32 %v280_v7, %v263_v6  ;;  %v452_v6 = vunpack.c.l.bf16 %v451_v5 }
 0x521   :  { %924 = vtanh.f32 %v284_v8  ;;  %v878_v11 = vmul.f32 -1.442695, %v284_v8 }
 0x523   :  { %926 = vpow2.f32 %v878_v11 }
 0x526   :  { %v282_v9 = vpop.f32.mrf.mxu2 }
 0x527   :  { %v925_v10 = vpop.eup %924 }
 0x528   :  { %307 = vrot.lane.b32.xlu0 %v925_v10, %s1054_s21 }
 0x529   :  { %v927_v12 = vpop.eup %926 }
 0x52a   :  { %v288_v13 = vadd.f32 1.0, %v927_v12 }
 0x52c   :  { %928 = vrcp.f32 %v288_v13  ;;  %v300_v19 = vand.u32 2147483648, %v288_v13  ;;  %vm294_vm11 = vweird.f32 %v288_v13  ;;  %v298_v20 = vand.u32 2147483647, %v288_v13 }
 0x52e   :  { %v301_v22 = vor.u32 1.1754944e-38, %v300_v19  ;;  %vm299_vm13 = vcmp.eq.f32.partialorder %v298_v20, 8.507059e+37 }
 0x532   :  { %v929_v14 = vpop.eup %928 }
 0x533   :  { %v290_v15 = vmul.f32 %v929_v14, %v288_v13  ;;  %vm295_vm10 = vweird.f32 %v929_v14 }
 0x534   :  { %vm296_vm12 = vmor %vm294_vm11, %vm295_vm10 }
 0x535   :  { %v291_v16 = vsub.f32 1.0, %v290_v15 }
 0x537   :  { %v292_v17 = vmul.f32 %v929_v14, %v291_v16 }
 0x539   :  { %v293_v18 = vadd.f32 %v929_v14, %v292_v17 }
 0x53b   :  { %v297_v21 = vsel %vm296_vm12, %v929_v14, %v293_v18 }
 0x53c   :  { %v302_v24 = vsel %vm299_vm13, %v301_v22, %v297_v21 }
 0x53d   :  { %v305_v26 = vmul.f32 %v302_v24, %v221_v61 }
 0x59a   :  { %v308_v23 = vpop.permute.xlu0 %307 }
 0x59b   :  { %v310_v25 = vmul.f32 %v308_v23, %v302_v24 }
 0x59d   :  { %312 = vrot.lane.b32.xlu1 %v310_v25, %s1057_s0 }
 0x60f   :  { %v313_v27 = vpop.permute.xlu1 %312 }
 0x610   :  { %v315_v28 = vadd.f32 %v313_v27, %v305_v26 }
 0x612   :  { %930 = vtanh.f32 %v315_v28 }
 0x618   :  { %v931_v29 = vpop.eup %930 }
 0x619   :  { %318 = vrot.lane.b32.xlu2 %v931_v29, %s1054_s21 }
 0x673   :  { %v319_v30 = vpop.permute.xlu2 %318 }
 0x674   :  { %v321_v31 = vmul.f32 %v319_v30, %v302_v24 }
 0x676   :  { %v1108_v32 = vpack.c.bf16 %v321_v31, %v321_v31 }
 0x678   :  { %v359_v33 = vunpack.c.l.b16 %v1108_v32 }
 0x67a   :  { %v360_v35 = vpack.c.b16 %v359_v33, %v359_v33 }
 0x67c   :  { %361 = vrot.lane.b32.xlu0 %v360_v35, %s1057_s0 }
 0x6ee   :  { %v362_v36 = vpop.permute.xlu0 %361 }
 0x6ef   :  { %880 = vmatmul.msk.bf16.vlgmr.msra.gmra.mxu3 %vm73_vm1, %v362_v36 }
 0x772   :  { %v375_v39 = vpop.f32.mrf.mxu3 }
 0x773   :  { %v379_v40 = vadd.f32 %v375_v39, %v358_v38  ;;  %v546_v38 = vld [vmem:[#allocation4 + $0x5] sm:$0x1] }
 0x774   :  { %v547_v39 = vunpack.c.l.bf16 %v546_v38 }
 0x775   :  { %932 = vtanh.f32 %v379_v40  ;;  %v881_v43 = vmul.f32 -1.442695, %v379_v40 }
 0x777   :  { %934 = vpow2.f32 %v881_v43 }
 0x77a   :  { %v377_v41 = vpop.f32.mrf.mxu3 }
 0x77b   :  { %v933_v42 = vpop.eup %932 }
 0x77c   :  { %402 = vrot.lane.b32.xlu1 %v933_v42, %s1054_s21 }
 0x77d   :  { %v935_v44 = vpop.eup %934 }
 0x77e   :  { %v383_v45 = vadd.f32 1.0, %v935_v44 }
 0x780   :  { %936 = vrcp.f32 %v383_v45  ;;  %v395_v51 = vand.u32 2147483648, %v383_v45  ;;  %vm389_vm15 = vweird.f32 %v383_v45  ;;  %v393_v52 = vand.u32 2147483647, %v383_v45 }
 0x782   :  { %v396_v54 = vor.u32 1.1754944e-38, %v395_v51  ;;  %vm394_vm3 = vcmp.eq.f32.partialorder %v393_v52, 8.507059e+37 }
 0x786   :  { %v937_v46 = vpop.eup %936 }
 0x787   :  { %v385_v47 = vmul.f32 %v937_v46, %v383_v45  ;;  %vm390_vm14 = vweird.f32 %v937_v46 }
 0x788   :  { %vm391_vm2 = vmor %vm389_vm15, %vm390_vm14 }
 0x789   :  { %v386_v48 = vsub.f32 1.0, %v385_v47 }
 0x78b   :  { %v387_v49 = vmul.f32 %v937_v46, %v386_v48 }
 0x78d   :  { %v388_v50 = vadd.f32 %v937_v46, %v387_v49 }
 0x78f   :  { %v392_v53 = vsel %vm391_vm2, %v937_v46, %v388_v50  ;;  %vm135_vm2 = vcmask 1040384  }
 0x790   :  { %v397_v56 = vsel %vm394_vm3, %v396_v54, %v392_v53 }
 0x791   :  { %v400_v58 = vmul.f32 %v397_v56, %v315_v28 }
 0x7ee   :  { %v403_v55 = vpop.permute.xlu1 %402 }
 0x7ef   :  { %v405_v57 = vmul.f32 %v403_v55, %v397_v56 }
 0x7f1   :  { %407 = vrot.lane.b32.xlu2 %v405_v57, %s1057_s0 }
 0x84b   :  { %v408_v59 = vpop.permute.xlu2 %407 }
 0x84c   :  { %v410_v60 = vadd.f32 %v408_v59, %v400_v58 }
 0x84e   :  { %938 = vtanh.f32 %v410_v60 }
 0x854   :  { %v939_v61 = vpop.eup %938 }
 0x855   :  { %413 = vrot.lane.b32.xlu0 %v939_v61, %s1054_s21 }
 0x8c7   :  { %v414_v62 = vpop.permute.xlu0 %413 }
 0x8c8   :  { %v416_v63 = vmul.f32 %v414_v62, %v397_v56 }
 0x8ca   :  { %v1116_v0 = vpack.c.bf16 %v416_v63, %v416_v63 }
 0x8cc   :  { %v453_v2 = vunpack.c.l.b16 %v1116_v0 }
 0x8ce   :  { %v454_v3 = vpack.c.b16 %v453_v2, %v453_v2 }
 0x8d0   :  { %455 = vrot.lane.b32.xlu1 %v454_v3, %s1057_s0 }
 0x942   :  { %v456_v4 = vpop.permute.xlu1 %455 }
 0x943   :  { %883 = vmatmul.msk.bf16.vlgmr.msrb.gmra.mxu0 %vm73_vm1, %v456_v4 }
 0x9c0   :  { %v469_v7 = vpop.f32.mrf.mxu0 }
 0x9c1   :  { %v473_v8 = vadd.f32 %v469_v7, %v452_v6  ;;  %v640_v7 = vld [vmem:[#allocation4 + $0x6] sm:$0x1] }
 0x9c3   :  { %940 = vtanh.f32 %v473_v8  ;;  %v884_v11 = vmul.f32 -1.442695, %v473_v8  ;;  %v641_v8 = vunpack.c.l.bf16 %v640_v7 }
 0x9c5   :  { %942 = vpow2.f32 %v884_v11 }
 0x9c8   :  { %v471_v9 = vpop.f32.mrf.mxu0 }
 0x9c9   :  { %v941_v10 = vpop.eup %940 }
 0x9ca   :  { %496 = vrot.lane.b32.xlu2 %v941_v10, %s1054_s21 }
 0x9cb   :  { %v943_v12 = vpop.eup %942 }
 0x9cc   :  { %v477_v13 = vadd.f32 1.0, %v943_v12 }
 0x9ce   :  { %944 = vrcp.f32 %v477_v13  ;;  %v489_v19 = vand.u32 2147483648, %v477_v13  ;;  %vm483_vm5 = vweird.f32 %v477_v13  ;;  %v487_v20 = vand.u32 2147483647, %v477_v13 }
 0x9d0   :  { %v490_v22 = vor.u32 1.1754944e-38, %v489_v19  ;;  %vm488_vm7 = vcmp.eq.f32.partialorder %v487_v20, 8.507059e+37 }
 0x9d4   :  { %v945_v14 = vpop.eup %944 }
 0x9d5   :  { %v479_v15 = vmul.f32 %v945_v14, %v477_v13  ;;  %vm484_vm4 = vweird.f32 %v945_v14 }
 0x9d6   :  { %vm485_vm6 = vmor %vm483_vm5, %vm484_vm4 }
 0x9d7   :  { %v480_v16 = vsub.f32 1.0, %v479_v15 }
 0x9d9   :  { %v481_v17 = vmul.f32 %v945_v14, %v480_v16 }
 0x9db   :  { %v482_v18 = vadd.f32 %v945_v14, %v481_v17 }
 0x9dd   :  { %v486_v21 = vsel %vm485_vm6, %v945_v14, %v482_v18  ;;  %vm158_vm6 = vcmask 253952  }
 0x9de   :  { %v491_v24 = vsel %vm488_vm7, %v490_v22, %v486_v21  ;;  %vm159_vm7 = vsmask.f32 256 }
 0x9df   :  { %v494_v26 = vmul.f32 %v491_v24, %v410_v60 }
 0xa24   :  { %v497_v23 = vpop.permute.xlu2 %496 }
 0xa25   :  { %v499_v25 = vmul.f32 %v497_v23, %v491_v24 }
 0xa27   :  { %501 = vrot.lane.b32.xlu0 %v499_v25, %s1057_s0 }
 0xa99   :  { %v502_v27 = vpop.permute.xlu0 %501 }
 0xa9a   :  { %v504_v28 = vadd.f32 %v502_v27, %v494_v26 }
 0xa9c   :  { %946 = vtanh.f32 %v504_v28 }
 0xaa2   :  { %v947_v29 = vpop.eup %946 }
 0xaa3   :  { %507 = vrot.lane.b32.xlu1 %v947_v29, %s1054_s21 }
 0xb15   :  { %v508_v30 = vpop.permute.xlu1 %507 }
 0xb16   :  { %v510_v31 = vmul.f32 %v508_v30, %v491_v24 }
 0xb18   :  { %v1124_v33 = vpack.c.bf16 %v510_v31, %v510_v31 }
 0xb1a   :  { %v548_v35 = vunpack.c.l.b16 %v1124_v33 }
 0xb1c   :  { %v549_v36 = vpack.c.b16 %v548_v35, %v548_v35 }
 0xb1e   :  { %550 = vrot.lane.b32.xlu2 %v549_v36, %s1057_s0 }
 0xb78   :  { %v551_v37 = vpop.permute.xlu2 %550 }
 0xb79   :  { %886 = vmatmul.msk.bf16.vlgmr.msrb.gmra.mxu1 %vm73_vm1, %v551_v37 }
 0xbf6   :  { %v564_v40 = vpop.f32.mrf.mxu1 }
 0xbf7   :  { %v568_v41 = vadd.f32 %v564_v40, %v547_v39 }
 0xbf9   :  { %948 = vtanh.f32 %v568_v41  ;;  %v887_v44 = vmul.f32 -1.442695, %v568_v41  ;;  %v735_v41 = vld [vmem:[#allocation4 + $0x7] sm:$0x1] }
 0xbfb   :  { %950 = vpow2.f32 %v887_v44 }
 0xbfe   :  { %v566_v42 = vpop.f32.mrf.mxu1 }
 0xbff   :  { %v949_v43 = vpop.eup %948  ;;  %v736_v42 = vunpack.c.l.bf16 %v735_v41 }
 0xc00   :  { %591 = vrot.lane.b32.xlu0 %v949_v43, %s1054_s21 }
 0xc01   :  { %v951_v45 = vpop.eup %950 }
 0xc02   :  { %v572_v46 = vadd.f32 1.0, %v951_v45  ;;  %v134_v45 = vrot.slane %v1092_v34, 3 }
 0xc04   :  { %952 = vrcp.f32 %v572_v46  ;;  %v584_v52 = vand.u32 2147483648, %v572_v46  ;;  %vm578_vm9 = vweird.f32 %v572_v46  ;;  %v582_v53 = vand.u32 2147483647, %v572_v46 }
 0xc06   :  { %v585_v55 = vor.u32 1.1754944e-38, %v584_v52  ;;  %vm583_vm11 = vcmp.eq.f32.partialorder %v582_v53, 8.507059e+37 }
 0xc0a   :  { %v953_v47 = vpop.eup %952 }
 0xc0b   :  { %v574_v48 = vmul.f32 %v953_v47, %v572_v46  ;;  %vm579_vm8 = vweird.f32 %v953_v47 }
 0xc0c   :  { %vm580_vm10 = vmor %vm578_vm9, %vm579_vm8  ;;  %vm347_vm9 = vcmask 254977  }
 0xc0d   :  { %v575_v49 = vsub.f32 1.0, %v574_v48  ;;  %vm1191_vm8 = vmand %vm158_vm6, %vm159_vm7  ;;  %vm631_vm7 = vsmask.f32 7946 }
 0xc0f   :  { %v576_v50 = vmul.f32 %v953_v47, %v575_v49 }
 0xc11   :  { %v577_v51 = vadd.f32 %v953_v47, %v576_v50  ;;  %v138_v50 = vsel %vm135_vm2, %v1092_v34, %v134_v45 }
 0xc12   :  { %v873_v52 = vpack.i.b16 %v138_v50, %v138_v50 }
 0xc13   :  { %v581_v54 = vsel %vm580_vm10, %v953_v47, %v577_v51  ;;  %v1058_v47 = vmov 286326784   ;;  %v324_v51 = vrot.slane %v1108_v32, 3  ;;  %vm348_vm10 = vsmask.f32 1280 }
 0xc14   :  { %v586_v57 = vsel %vm583_vm11, %v585_v55, %v581_v54  ;;  %v145_v48 = vunpack.c.l.s4 %v1058_v47  ;;  %vm1202_vm11 = vmand %vm347_vm9, %vm348_vm10 }
 0xc15   :  { %v589_v59 = vmul.f32 %v586_v57, %v504_v28  ;;  %v1154_v54 = vsel %vm135_vm2, %v1108_v32, %v324_v51 }
 0xc16   :  { %v1150_v53 = vunpack.c.0.s8 %v145_v48 }
 0xc18   :  { %v147_v55 = vperm.slane %v873_v52, %v1150_v53 }
 0xc72   :  { %v592_v56 = vpop.permute.xlu0 %591 }
 0xc73   :  { %v594_v58 = vmul.f32 %v592_v56, %v586_v57  ;;  %v330_v56 = vunpack.i.h.s16 %v1154_v54 }
 0xc75   :  { %596 = vrot.lane.b32.xlu1 %v594_v58, %s1057_s0 }
 0xce7   :  { %v597_v60 = vpop.permute.xlu1 %596 }
 0xce8   :  { %v599_v61 = vadd.f32 %v597_v60, %v589_v59  ;;  %v230_v59 = vrot.slane %v1100_v1, 3 }
 0xcea   :  { %954 = vtanh.f32 %v599_v61 }
 0xcf0   :  { %v955_v62 = vpop.eup %954 }
 0xcf1   :  { %602 = vrot.lane.b32.xlu2 %v955_v62, %s1054_s21 }
 0xd4b   :  { %v603_v63 = vpop.permute.xlu2 %602 }
 0xd4c   :  { %v605_v2 = vmul.f32 %v603_v63, %v586_v57  ;;  %v332_v57 = vpack.i.b16 %v330_v56, %v330_v56 }
 0xd4e   :  { %v1132_v3 = vpack.c.bf16 %v605_v2, %v605_v2  ;;  %v340_v34 = vperm.slane %v332_v57, %v1150_v53 }
 0xd50   :  { %v642_v4 = vunpack.c.l.b16 %v1132_v3 }
 0xd52   :  { %v643_v5 = vpack.c.b16 %v642_v4, %v642_v4  ;;  %v608_v4 = vrot.slane %v1132_v3, 3 }
 0xd54   :  { %644 = vrot.lane.b32.xlu0 %v643_v5, %s1057_s0 }
 0xdc6   :  { %v645_v6 = vpop.permute.xlu0 %644 }
 0xdc7   :  { %889 = vmatmul.msk.bf16.vlgmr.msrb.gmra.mxu2 %vm73_vm1, %v645_v6  ;;  %v1178_v6 = vsel %vm135_vm2, %v1132_v3, %v608_v4 }
 0xdc8   :  { %v614_v51 = vunpack.i.h.s16 %v1178_v6 }
 0xdca   :  { %v616_v52 = vpack.i.b16 %v614_v51, %v614_v51 }
 0xe4a   :  { %v658_v9 = vpop.f32.mrf.mxu2 }
 0xe4b   :  { %v662_v10 = vadd.f32 %v658_v9, %v641_v8 }
 0xe4d   :  { %956 = vtanh.f32 %v662_v10  ;;  %v890_v13 = vmul.f32 -1.442695, %v662_v10 }
 0xe4f   :  { %958 = vpow2.f32 %v890_v13 }
 0xe52   :  { %v660_v11 = vpop.f32.mrf.mxu2 }
 0xe53   :  { %v957_v12 = vpop.eup %956 }
 0xe54   :  { %685 = vrot.lane.b32.xlu1 %v957_v12, %s1054_s21 }
 0xe55   :  { %v959_v14 = vpop.eup %958 }
 0xe56   :  { %v666_v15 = vadd.f32 1.0, %v959_v14 }
 0xe58   :  { %960 = vrcp.f32 %v666_v15  ;;  %v678_v21 = vand.u32 2147483648, %v666_v15  ;;  %vm672_vm13 = vweird.f32 %v666_v15  ;;  %v676_v22 = vand.u32 2147483647, %v666_v15 }
 0xe5a   :  { %v679_v24 = vor.u32 1.1754944e-38, %v678_v21  ;;  %vm677_vm15 = vcmp.eq.f32.partialorder %v676_v22, 8.507059e+37  ;;  %v141_v22 = vunpack.i.h.s16 %v138_v50 }
 0xe5e   :  { %v961_v16 = vpop.eup %960 }
 0xe5f   :  { %v668_v17 = vmul.f32 %v961_v16, %v666_v15  ;;  %vm673_vm12 = vweird.f32 %v961_v16 }
 0xe60   :  { %vm674_vm14 = vmor %vm672_vm13, %vm673_vm12  ;;  %vm725_vm12 = vcmask 257027   ;;  %vm726_vm13 = vsmask.f32 3328 }
 0xe61   :  { %v669_v18 = vsub.f32 1.0, %v668_v17 }
 0xe63   :  { %v670_v19 = vmul.f32 %v961_v16, %v669_v18 }
 0xe65   :  { %v671_v20 = vadd.f32 %v961_v16, %v670_v19 }
 0xe67   :  { %v675_v23 = vsel %vm674_vm14, %v961_v16, %v671_v20  ;;  %vm1213_vm14 = vmand %vm725_vm12, %vm726_vm13 }
 0xe68   :  { %v680_v26 = vsel %vm677_vm15, %v679_v24, %v675_v23  ;;  %v143_v23 = vpack.i.b16 %v141_v22, %v141_v22  ;;  %v513_v24 = vrot.slane %v1124_v33, 3  ;;  %vm536_vm15 = vcmask 256002  }
 0xe69   :  { %v683_v28 = vmul.f32 %v680_v26, %v599_v61  ;;  %v1169_v61 = vsel %vm135_vm2, %v1100_v1, %v230_v59  ;;  %v888_v1 = vpack.i.b16 %v1178_v6, %v1178_v6 }
 0xe6a   :  { %v236_v63 = vunpack.i.h.s16 %v1169_v61 }
 0xe6b   :  { %v620_v7 = vperm.slane %v888_v1, %v1150_v53 }
 0xe6c   :  { %v238_v2 = vpack.i.b16 %v236_v63, %v236_v63 }
 0xe6e   :  { %v246_v5 = vperm.slane %v238_v2, %v1150_v53 }
 0xec6   :  { %v686_v25 = vpop.permute.xlu1 %685 }
 0xec7   :  { %v688_v27 = vmul.f32 %v686_v25, %v680_v26 }
 0xec9   :  { %690 = vrot.lane.b32.xlu2 %v688_v27, %s1057_s0 }
 0xf23   :  { %v691_v29 = vpop.permute.xlu2 %690 }
 0xf24   :  { %v1139_v30 = vadd.f32 %v691_v29, %v683_v28  ;;  %v151_v29 = vperm.slane %v143_v23, %v1150_v53 }
 0xf26   :  { %962 = vtanh.f32 %v1139_v30 }
 0xf2c   :  { %v963_v31 = vpop.eup %962 }
 0xf2d   :  { %696 = vrot.lane.b32.xlu0 %v963_v31, %s1054_s21  ;;  %v516_v31 = vsel %vm135_vm2, %v1124_v33, %v513_v24 }
 0xf2e   :  { %v519_v6 = vunpack.i.h.s16 %v516_v31 }
 0xf9f   :  { %v697_v35 = vpop.permute.xlu0 %696 }
 0xfa0   :  { %v699_v36 = vmul.f32 %v697_v35, %v680_v26  ;;  %v161_v26 = vld [vmem:[#allocation9] sm:$0x1]  ;;  %v885_v35 = vpack.i.b16 %v516_v31, %v516_v31 }
 0xfa2   :  { %v700_v37 = vpack.c.bf16 %v699_v36, %v699_v36 }
 0xfa4   :  { %v737_v38 = vunpack.c.l.b16 %v700_v37  ;;  %v702_v58 = vrot.slane %v700_v37, 3 }
 0xfa6   :  { %v738_v39 = vpack.c.b16 %v737_v38, %v737_v38  ;;  %v1162_v60 = vsel %vm135_vm2, %v700_v37, %v702_v58  ;;  %v353_v37 = vld [vmem:[#allocation9 + $0x4] sm:$0x2]  ;;  %v164_v58 = vld [vmem:[#allocation9 + $0x4] sm:$0x1] }
 0xfa7   :  { %v891_v32 = vpack.i.b16 %v1162_v60, %v1162_v60  ;;  %v708_v33 = vunpack.i.h.s16 %v1162_v60 }
 0xfa8   :  { %739 = vrot.lane.b32.xlu1 %v738_v39, %s1057_s0 }
 0xfa9   :  { %v714_v62 = vperm.slane %v891_v32, %v1150_v53  ;;  %v710_v41 = vpack.i.b16 %v708_v33, %v708_v33  ;;  %v879_v32 = vpack.i.b16 %v1154_v54, %v1154_v54 }
 0xfab   :  { %v718_v47 = vperm.slane %v710_v41, %v1150_v53 }
0x101a   :  { %v740_v40 = vpop.permute.xlu1 %739 }
0x101b   :  { %892 = vmatmul.msk.bf16.vlgmr.msrb.gmra.mxu3 %vm73_vm1, %v740_v40  ;;  %v525_v40 = vperm.slane %v885_v35, %v1150_v53 }
0x109e   :  { %v753_v43 = vpop.f32.mrf.mxu3 }
0x109f   :  { %v757_v44 = vadd.f32 %v753_v43, %v736_v42  ;;  %v419_v42 = vrot.slane %v1116_v0, 3 }
0x10a1   :  { %964 = vtanh.f32 %v757_v44  ;;  %v893_v8 = vmul.f32 -1.442695, %v757_v44  ;;  %v728_v44 = vld [vmem:[#allocation9] sm:$0x8]  ;;  %v422_v48 = vsel %vm135_vm2, %v1116_v0, %v419_v42 }
0x10a3   :  { %966 = vpow2.f32 %v893_v8  ;;  %v521_v8 = vpack.i.b16 %v519_v6, %v519_v6 }
0x10a6   :  { %v755_v46 = vpop.f32.mrf.mxu3 }
0x10a7   :  { %v965_v49 = vpop.eup %964 }
0x10a8   :  { %780 = vrot.lane.b32.xlu2 %v965_v49, %s1054_s21  ;;  %v882_v49 = vpack.i.b16 %v422_v48, %v422_v48 }
0x10a9   :  { %v967_v9 = vpop.eup %966 }
0x10aa   :  { %v761_v10 = vadd.f32 1.0, %v967_v9  ;;  %v431_v50 = vperm.slane %v882_v49, %v1150_v53  ;;  %v731_v9 = vld [vmem:[#allocation9 + $0x4] sm:$0x8] }
0x10ac   :  { %968 = vrcp.f32 %v761_v10  ;;  %v773_v15 = vand.u32 2147483648, %v761_v10  ;;  %vm767_vm3 = vweird.f32 %v761_v10  ;;  %v771_v16 = vand.u32 2147483647, %v761_v10 }
0x10ae   :  { %v774_v18 = vor.u32 1.1754944e-38, %v773_v15  ;;  %vm772_vm5 = vcmp.eq.f32.partialorder %v771_v16, 8.507059e+37  ;;  %v876_v16 = vpack.i.b16 %v1169_v61, %v1169_v61 }
0x10b0   :  { %152 = vrot.lane.b32.xlu2 %v147_v55, %s1057_s0  ;;  %v624_v55 = vperm.slane %v616_v52, %v1150_v53 }
0x10b2   :  { %v969_v11 = vpop.eup %968 }
0x10b3   :  { %v763_v12 = vmul.f32 %v969_v11, %v761_v10  ;;  %vm768_vm1 = vweird.f32 %v969_v11 }
0x10b4   :  { %vm769_vm4 = vmor %vm767_vm3, %vm768_vm1  ;;  %vm537_vm1 = vsmask.f32 2304  ;;  %vm253_vm3 = vsmask.f32 7938 }
0x10b5   :  { %v764_v13 = vsub.f32 1.0, %v763_v12  ;;  %v529_v12 = vperm.slane %v521_v8, %v1150_v53 }
0x10b7   :  { %v765_v14 = vmul.f32 %v969_v11, %v764_v13 }
0x10b8   :  { %343 = vrot.lane.b32.xlu2 %v340_v34, %s1057_s0 }
0x10b9   :  { %v766_v3 = vadd.f32 %v969_v11, %v765_v14 }
0x10bb   :  { %v770_v17 = vsel %vm769_vm4, %v969_v11, %v766_v3  ;;  %vm1236_vm4 = vmand %vm536_vm15, %vm537_vm1 }
0x10bc   :  { %v1185_v20 = vsel %vm772_vm5, %v774_v18, %v770_v17  ;;  %vm1241_vm5 = vmand %vm158_vm6, %vm253_vm3  ;;  %v242_v17 = vperm.slane %v876_v16, %v1150_v53  ;;  %v425_v18 = vunpack.i.h.s16 %v422_v48 }
0x10bd   :  { %v778_v56 = vmul.f32 %v1185_v20, %v1139_v30  ;;  %vm1252_vm6 = vmand %vm536_vm15, %vm631_vm7 }
0x10c0   :  { %719 = vrot.lane.b32.xlu2 %v714_v62, %s1057_s0  ;;  %v539_v62 = vld [vmem:[#allocation9] sm:$0x4] }
0x10c8   :  { %249 = vrot.lane.b32.xlu2 %v246_v5, %s1057_s0  ;;  %v336_v5 = vperm.slane %v879_v32, %v1150_v53 }
0x10d0   :  { %625 = vrot.lane.b32.xlu2 %v620_v7, %s1057_s0 }
0x1102   :  { %v781_v19 = vpop.permute.xlu2 %780 }
0x1103   :  { %v783_v21 = vmul.f32 %v781_v19, %v1185_v20  ;;  %v427_v19 = vpack.i.b16 %v425_v18, %v425_v18 }
0x1105   :  { %785 = vrot.lane.b32.xlu0 %v783_v21, %s1057_s0  ;;  %v435_v21 = vperm.slane %v427_v19, %v1150_v53 }
0x110a   :  { %v153_v27 = vpop.permute.xlu2 %152 }
0x110b   :  { %v162_v28 = vsel %vm1191_vm8, %v153_v27, %v161_v26  ;;  %v350_v26 = vld [vmem:[#allocation9] sm:$0x2] }
0x110c   :  { %163 = vst [vmem:[#allocation9] sm:$0x1] %v162_v28 }
0x110d   :  { %154 = vrot.lane.b32.xlu0 %v151_v29, %s1057_s0 }
0x1112   :  { %v344_v38 = vpop.permute.xlu2 %343 }
0x1113   :  { %v354_v39 = vsel %vm1202_vm11, %v344_v38, %v353_v37 }
0x1114   :  { %355 = vst [vmem:[#allocation9 + $0x4] sm:$0x2] %v354_v39  ;;  %v542_v39 = vld [vmem:[#allocation9 + $0x4] sm:$0x4] }
0x1115   :  { %530 = vrot.lane.b32.xlu0 %v525_v40, %s1057_s0 }
0x111a   :  { %v720_v45 = vpop.permute.xlu2 %719 }
0x111b   :  { %v729_v46 = vsel %vm1213_vm14, %v720_v45, %v728_v44  ;;  %v255_v44 = vld [vmem:[#allocation9] sm:$0x1] }
0x111c   :  { %730 = vst [vmem:[#allocation9] sm:$0x8] %v729_v46 }
0x111d   :  { %721 = vrot.lane.b32.xlu0 %v718_v47, %s1057_s0 }
0x1122   :  { %v250_v63 = vpop.permute.xlu2 %249 }
0x1125   :  { %436 = vrot.lane.b32.xlu0 %v431_v50, %s1057_s0  ;;  %v447_v50 = vld [vmem:[#allocation9 + $0x4] sm:$0x2] }
0x112a   :  { %v626_v13 = vpop.permute.xlu2 %625 }
0x112d   :  { %627 = vrot.lane.b32.xlu0 %v624_v55, %s1057_s0 }
0x1177   :  { %v786_v57 = vpop.permute.xlu0 %785 }
0x1178   :  { %v788_v0 = vadd.f32 %v786_v57, %v778_v56 }
0x117a   :  { %970 = vtanh.f32 %v788_v0 }
0x117f   :  { %v155_v34 = vpop.permute.xlu0 %154 }
0x1180   :  { %v971_v59 = vpop.eup %970  ;;  %v165_v60 = vsel %vm1191_vm8, %v155_v34, %v164_v58  ;;  %vm442_vm8 = vsmask.f32 7942  ;;  %v822_v58 = vld [vmem:[#allocation9] sm:$0x8] }
0x1181   :  { %166 = vst [vmem:[#allocation9 + $0x4] sm:$0x1] %v165_v60  ;;  %791 = vrot.lane.b32.xlu1 %v971_v59, %s1054_s21 }
0x1187   :  { %v531_v4 = vpop.permute.xlu0 %530 }
0x1188   :  { %v540_v54 = vsel %vm1236_vm4, %v531_v4, %v539_v62  ;;  %v258_v1 = vld [vmem:[#allocation9 + $0x4] sm:$0x1] }
0x1189   :  { %541 = vst [vmem:[#allocation9] sm:$0x4] %v540_v54  ;;  %341 = vrot.lane.b32.xlu1 %v336_v5, %s1057_s0  ;;  %v259_v7 = vsel %vm1241_vm5, %v250_v63, %v258_v1 }
0x118a   :  { %260 = vst [vmem:[#allocation9 + $0x4] sm:$0x1] %v259_v7 }
0x118f   :  { %v722_v11 = vpop.permute.xlu0 %721 }
0x1190   :  { %v633_v14 = vld [vmem:[#allocation9] sm:$0x4]  ;;  %v732_v3 = vsel %vm1213_vm14, %v722_v11, %v731_v9 }
0x1191   :  { %v634_v15 = vsel %vm1252_vm6, %v626_v13, %v633_v14  ;;  %733 = vst [vmem:[#allocation9 + $0x4] sm:$0x8] %v732_v3  ;;  %532 = vrot.lane.b32.xlu1 %v529_v12, %s1057_s0 }
0x1192   :  { %635 = vst [vmem:[#allocation9] sm:$0x4] %v634_v15 }
0x1197   :  { %v437_v40 = vpop.permute.xlu0 %436 }
0x1198   :  { %v825_v56 = vld [vmem:[#allocation9 + $0x4] sm:$0x8] }
0x1199   :  { %247 = vrot.lane.b32.xlu1 %v242_v17, %s1057_s0 }
0x119f   :  { %v628_v46 = vpop.permute.xlu0 %627 }
0x11a1   :  { %438 = vrot.lane.b32.xlu1 %v435_v21, %s1057_s0 }
0x11f3   :  { %v792_v22 = vpop.permute.xlu1 %791 }
0x11f4   :  { %v794_v23 = vmul.f32 %v792_v22, %v1185_v20 }
0x11f6   :  { %v795_v24 = vpack.c.bf16 %v794_v23, %v794_v23  ;;  %829 = vst [vmem:[#allocation1] ss:$4 sm:$0xff] %v794_v23 }
0x11f8   :  { %v797_v25 = vrot.slane %v795_v24, 3 }
0x11fa   :  { %v800_v27 = vsel %vm135_vm2, %v795_v24, %v797_v25  ;;  %vm1278_vm2 = vmand %vm347_vm9, %vm442_vm8  ;;  %vm820_vm9 = vsmask.f32 7950 }
0x11fb   :  { %v342_v61 = vpop.permute.xlu1 %341  ;;  %v894_v28 = vpack.i.b16 %v800_v27, %v800_v27  ;;  %v803_v29 = vunpack.i.h.s16 %v800_v27  ;;  %vm821_vm10 = vmand %vm725_vm12, %vm820_vm9 }
0x11fc   :  { %v351_v31 = vsel %vm1202_vm11, %v342_v61, %v350_v26 }
0x11fd   :  { %352 = vst [vmem:[#allocation9] sm:$0x2] %v351_v31  ;;  %v830_v35 = vld.sshfl [vmem:[#allocation1] sm:$0xff pattern:$0x73625140]  ;;  %v809_v37 = vperm.slane %v894_v28, %v1150_v53  ;;  %v805_v38 = vpack.i.b16 %v803_v29, %v803_v29 }
0x11fe   :  { %837 = vst [vmem:[#allocation1] ss:$4 sm:$0xff] %v788_v0  ;;  %831 = vrot.lane.b32.xlu0 %v830_v35, %s1057_s0 }
0x11ff   :  { %814 = vrot.lane.b32.xlu1 %v809_v37, %s1057_s0  ;;  %v813_v20 = vperm.slane %v805_v38, %v1150_v53 }
0x1201   :  { %816 = vrot.lane.b32.xlu2 %v813_v20, %s1057_s0 }
0x1203   :  { %v533_v33 = vpop.permute.xlu1 %532 }
0x1204   :  { %v543_v41 = vsel %vm1236_vm4, %v533_v33, %v542_v39  ;;  %v444_v42 = vld [vmem:[#allocation9] sm:$0x2] }
0x1205   :  { %544 = vst [vmem:[#allocation9 + $0x4] sm:$0x4] %v543_v41  ;;  %v838_v43 = vld.sshfl [vmem:[#allocation1] sm:$0xff pattern:$0x73625140]  ;;  %v445_v53 = vsel %vm1278_vm2, %v437_v40, %v444_v42 }
0x1206   :  { %446 = vst [vmem:[#allocation9] sm:$0x2] %v445_v53 }
0x1207   :  { %839 = vrot.lane.b32.xlu1 %v838_v43, %s1059_s1 }
0x120b   :  { %v248_v45 = vpop.permute.xlu1 %247 }
0x120c   :  { %v636_v47 = vld [vmem:[#allocation9 + $0x4] sm:$0x4]  ;;  %v256_v48 = vsel %vm1241_vm5, %v248_v45, %v255_v44 }
0x120d   :  { %v637_v49 = vsel %vm1252_vm6, %v628_v46, %v636_v47  ;;  %257 = vst [vmem:[#allocation9] sm:$0x1] %v256_v48 }
0x120e   :  { %638 = vst [vmem:[#allocation9 + $0x4] sm:$0x4] %v637_v49 }
0x1213   :  { %v439_v51 = vpop.permute.xlu1 %438 }
0x1214   :  { %v448_v52 = vsel %vm1278_vm2, %v439_v51, %v447_v50 }
0x1215   :  { %449 = vst [vmem:[#allocation9 + $0x4] sm:$0x2] %v448_v52 }
0x125b   :  { %v817_v55 = vpop.permute.xlu2 %816 }
0x125c   :  { %v826_v57 = vsel %vm821_vm10, %v817_v55, %v825_v56 }
0x125d   :  { %827 = vst [vmem:[#allocation9 + $0x4] sm:$0x8] %v826_v57 }
0x1270   :  { %v832_v0 = vpop.permute.xlu0 %831 }
0x1271   :  { %835 = vst.msk [vmem:[#allocation2] sm:$0x3] %vm49_vm0, %v832_v0  ;;  %v815_v34 = vpop.permute.xlu1 %814 }
0x1272   :  { %v823_v59 = vsel %vm821_vm10, %v815_v34, %v822_v58 }
0x1273   :  { %824 = vst [vmem:[#allocation9] sm:$0x8] %v823_v59 }
0x1274   :  { %855 = dma.vmem_to_hbm [thread:$0]  %s848_s24, 128, %s850_s27, [#allocation6], %s1054_s21, %s1054_s21, %s1055_s22  }
0x1279   :  { %v840_v60 = vpop.permute.xlu1 %839 }
0x127a   :  { %842 = vst.msk [vmem:[#allocation3] sm:$0x3] %vm49_vm0, %v840_v60 }
0x127b   :  { %1048 = dma.done.wait [#allocation6], 128  }
0x127c   :  { %1049 = vsyncadd [#allocation6], 4294967168 }
0x127d   :  { %860 = vsyncpa [#allocation5], 1 }
0x127e   :  { %861 = vsyncpa [#allocation8], 1 }
0x127f   :  { %862 = vsyncpa [#allocation6], 1 }

</bundles_post_ra>
